<compile_context>
chip_gen: v6e
topology: v6e:2x2x1
jax: 0.10.0
libtpu: 0.0.40
codegen_flags: <defaults>
</compile_context>

<pallas_src>
import functools

import jax
import jax.numpy as jnp
from jax.experimental import pallas as pl
from jax.experimental.pallas import tpu as pltpu


def _round_up(n, m):
    return -(-n // m) * m


def _slab_rows(hidden_dim, d_pad):
    """Row offsets inside the packed parameter slab (slab width = 8*hidden_dim lanes)."""
    r_wbig = 0                        # rows [0, 2H): W_big = [[w_hh0, w_ih1], [0, w_hh1]]
    r_ih0 = 2 * hidden_dim            # rows [2H, 2H + d_pad): w_ih0 (input projection)
    r_bias = r_ih0 + d_pad            # one row: [b0 | b1]
    r_fc = r_bias + 1                 # one row: [fc_w (H lanes) | fc_b (1 lane) | 0...]
    n_rows = _round_up(r_fc + 1, 8)
    return r_wbig, r_ih0, r_bias, r_fc, n_rows


# ----------------------------- kernel ------------------------------------- #

def lstm_model_kernel(x2d_ref, slab_ref, out_ref, xz0_ref, *,
                      hidden_dim, d_pad, seq_len, batch):
    H = hidden_dim
    G = 4 * H
    B = batch
    T = seq_len
    f32 = jnp.float32
    r_wbig, r_ih0, r_bias, r_fc, _ = _slab_rows(H, d_pad)

    # Hoisted layer-0 input projection for ALL timesteps (bias folded once); stored to
    # VMEM scratch so it is never held in vregs across the recurrence.
    w_ih0 = slab_ref[r_ih0:r_ih0 + d_pad, 0:G]                      # (d_pad, G)
    b0 = slab_ref[r_bias:r_bias + 1, 0:G]                           # (1, G)
    xz0_ref[...] = jnp.dot(x2d_ref[...], w_ih0, preferred_element_type=f32) + b0

    # Layer-1 bias broadcast hoisted out of the unrolled loop.
    b1 = jnp.broadcast_to(slab_ref[r_bias:r_bias + 1, G:2 * G], (B, G))

    def gates(z, c):
        # One full-width sigmoid + one full-width tanh (EUP), then exact lane slices.
        sig = jax.nn.sigmoid(z)                                     # lanes: i | f | . | o
        th = jnp.tanh(z)                                            # lanes: . | . | g | .
        i_g = sig[:, 0:H]
        f_g = sig[:, H:2 * H]
        g_g = th[:, 2 * H:3 * H]
        o_g = sig[:, 3 * H:4 * H]
        c_new = f_g * c + i_g * g_g                                 # (B, H), exact
        h_new = o_g * jnp.tanh(c_new)
        return h_new, c_new

    zeros_h = jnp.zeros((B, H), f32)

    # t = 0: zero initial state -> no recurrent contribution for layer 0.
    h0, c0 = gates(xz0_ref[0:B, :], zeros_h)
    h1, c1 = zeros_h, zeros_h

    # Wavefront over the two stacked layers: iteration t computes layer0(t) and
    # layer1(t-1) from ONE fused (B, 2H) @ (2H, 8H) matmul.  T is small & static ->
    # fully unrolled.
    # TODO(synk): switch to lax.fori_loop carrying (h0, c0, h1, c1) if seq_len grows >~16.
    for t in range(1, T):
        s = jnp.concatenate([h0, h1], axis=-1)                      # (B, 2H)
        z_all = jnp.dot(s, slab_ref[r_wbig:r_wbig + 2 * H, :],
                        preferred_element_type=f32)                 # (B, 8H)
        h0, c0 = gates(xz0_ref[t * B:(t + 1) * B, :] + z_all[:, 0:G], c0)
        h1, c1 = gates(z_all[:, G:2 * G] + b1, c1)

    # Drain layer1(T-1).
    s = jnp.concatenate([h0, h1], axis=-1)
    z1 = jnp.dot(s, slab_ref[r_wbig:r_wbig + 2 * H, G:2 * G],
                 preferred_element_type=f32) + b1
    h1, c1 = gates(z1, c1)

    # Final Linear(H -> 1) as a VPU multiply + lane reduction, then Sigmoid.
    # TODO(synk): training-mode dropout (p=0.2) omitted; eval-mode dropout is identity.
    fc_w = slab_ref[r_fc:r_fc + 1, 0:H]                             # (1, H)
    fc_b = slab_ref[r_fc:r_fc + 1, H:H + 1]                         # (1, 1)
    logit = jnp.sum(h1 * fc_w, axis=-1, keepdims=True) + fc_b
    out_ref[...] = jax.nn.sigmoid(logit)


# ------------------------ one-time parameter packing ----------------------- #

def pack_params(params):
    """Pack all LSTMModel parameters into a single (rows, 8H) f32 slab. Call ONCE."""
    input_dim = params["w_ih0"].shape[0]
    hidden_dim = params["w_hh0"].shape[0]
    G = 4 * hidden_dim
    assert params["fc_w"].shape[1] == 1, "fc lane-reduce path assumes output_dim == 1"
    d_pad = _round_up(input_dim, 128)
    _, r_ih0, r_bias, r_fc, n_rows = _slab_rows(hidden_dim, d_pad)

    slab = jnp.zeros((n_rows, 2 * G), jnp.float32)
    # W_big = [[w_hh0, w_ih1], [0, w_hh1]]  -> one fused recurrent matmul per timestep.
    slab = slab.at[0:hidden_dim, 0:G].set(params["w_hh0"])
    slab = slab.at[0:hidden_dim, G:2 * G].set(params["w_ih1"])
    slab = slab.at[hidden_dim:2 * hidden_dim, G:2 * G].set(params["w_hh1"])
    # Layer-0 input projection (feature dim zero-padded to d_pad lanes).
    slab = slab.at[r_ih0:r_ih0 + input_dim, 0:G].set(params["w_ih0"])
    # Biases packed on one row: [b0 | b1].
    slab = slab.at[r_bias, 0:G].set(params["b0"][0])
    slab = slab.at[r_bias, G:2 * G].set(params["b1"][0])
    # FC: fc_w in lanes [0, H), fc_b at lane H.
    slab = slab.at[r_fc, 0:hidden_dim].set(params["fc_w"][:, 0])
    slab = slab.at[r_fc, hidden_dim].set(params["fc_b"][0, 0])
    return slab


# ----------------------------- forward wrapper ------------------------------ #

@jax.jit
def lstm_model_forward(x, slab):
    """x: (batch, seq, input_dim) f32; slab: packed params from pack_params()."""
    batch, seq_len, input_dim = x.shape
    hidden_dim = slab.shape[1] // 8
    G = 4 * hidden_dim
    d_pad = _round_up(input_dim, 128)
    b_pad = _round_up(batch, 8)

    # Only per-call wrapper work: pad batch/features, flatten time-major (lane aligned).
    xp = jnp.pad(x, ((0, b_pad - batch), (0, 0), (0, d_pad - input_dim)))
    x2d = jnp.transpose(xp, (1, 0, 2)).reshape(seq_len * b_pad, d_pad)

    kernel = functools.partial(lstm_model_kernel, hidden_dim=hidden_dim,
                               d_pad=d_pad, seq_len=seq_len, batch=b_pad)
    vmem = pl.BlockSpec(memory_space=pltpu.MemorySpace.VMEM)
    out = pl.pallas_call(
        kernel,
        out_shape=jax.ShapeDtypeStruct((b_pad, 1), jnp.float32),
        in_specs=[vmem, vmem],
        out_specs=vmem,
        scratch_shapes=[pltpu.VMEM((seq_len * b_pad, G), jnp.float32)],
    )(x2d, slab)
    return out[:batch]


# -------------------------- parameter initialization ------------------------ #

def init_params(key, input_dim, hidden_dim, num_layers, output_dim):
    """Deterministic init matching PyTorch shapes (weights pre-transposed to (in, 4H))."""
    assert num_layers == 2
    k = 1.0 / jnp.sqrt(hidden_dim)
    keys = jax.random.split(key, 10)

    def u(k_, shape):
        return jax.random.uniform(k_, shape, jnp.float32, -k, k)

    return {
        # layer 0: input_dim -> hidden_dim
        "w_ih0": u(keys[0], (input_dim, 4 * hidden_dim)),
        "w_hh0": u(keys[1], (hidden_dim, 4 * hidden_dim)),
        "b0": u(keys[2], (1, 4 * hidden_dim)) + u(keys[3], (1, 4 * hidden_dim)),
        # layer 1: hidden_dim -> hidden_dim
        "w_ih1": u(keys[4], (hidden_dim, 4 * hidden_dim)),
        "w_hh1": u(keys[5], (hidden_dim, 4 * hidden_dim)),
        "b1": u(keys[6], (1, 4 * hidden_dim)) + u(keys[7], (1, 4 * hidden_dim)),
        # fc: hidden_dim -> output_dim
        "fc_w": u(keys[8], (hidden_dim, output_dim)),
        "fc_b": u(keys[9], (1, output_dim)),
    }


# --------------------------- pure-JAX reference ----------------------------- #

def reference_forward(x, params, hidden_dim):
    batch, seq_len, _ = x.shape
    h0 = jnp.zeros((batch, hidden_dim), jnp.float32)
    c0 = jnp.zeros((batch, hidden_dim), jnp.float32)
    h1 = jnp.zeros((batch, hidden_dim), jnp.float32)
    c1 = jnp.zeros((batch, hidden_dim), jnp.float32)

    def cell(x_t, h, c, w_ih, w_hh, b):
        z = x_t @ w_ih + h @ w_hh + b
        i = jax.nn.sigmoid(z[:, :hidden_dim])
        f = jax.nn.sigmoid(z[:, hidden_dim:2 * hidden_dim])
        g = jnp.tanh(z[:, 2 * hidden_dim:3 * hidden_dim])
        o = jax.nn.sigmoid(z[:, 3 * hidden_dim:])
        c_new = f * c + i * g
        return o * jnp.tanh(c_new), c_new

    for t in range(seq_len):
        h0, c0 = cell(x[:, t, :], h0, c0, params["w_ih0"], params["w_hh0"], params["b0"])
        h1, c1 = cell(h0, h1, c1, params["w_ih1"], params["w_hh1"], params["b1"])
    return jax.nn.sigmoid(h1 @ params["fc_w"] + params["fc_b"])


# -------------------------------- main ------------------------------------- #

if __name__ == "__main__":
    # Small shapes consistent with the module's forward.
    BATCH, SEQ, INPUT_DIM = 2, 8, 4
    HIDDEN_DIM, NUM_LAYERS, OUTPUT_DIM = 32, 2, 1

    key = jax.random.PRNGKey(0)
    kx, kp = jax.random.split(key)
    x = jax.random.normal(kx, (BATCH, SEQ, INPUT_DIM), jnp.float32)
    params = init_params(kp, INPUT_DIM, HIDDEN_DIM, NUM_LAYERS, OUTPUT_DIM)

    # One-time packing (kept OUT of the per-call hot path).
    slab = jax.block_until_ready(pack_params(params))

    out = lstm_model_forward(x, slab)
    out = jax.block_until_ready(out)

    ref = reference_forward(x, params, HIDDEN_DIM)
    assert out.shape == (BATCH, OUTPUT_DIM)
    assert jnp.allclose(out, ref, atol=1e-5, rtol=1e-5), (out, ref)

    print("KERNEL_OK")
</pallas_src>

<mosaic_0001>
module attributes {stable_mosaic.version = 11 : i64} {
  func.func @lstm_model_kernel(%arg0: memref<64x128xf32, #tpu.memory_space<vmem>>, %arg1: memref<200x256xf32, #tpu.memory_space<vmem>>, %arg2: memref<8x1xf32, #tpu.memory_space<vmem>>, %arg3: memref<64x128xf32, #tpu.memory_space<vmem>>) attributes {dimension_semantics = [], scalar_prefetch = 0 : i64, scratch_operands = 1 : i64, tpu.core_type = #tpu.core_type<tc>} {
    %c64 = arith.constant 64 : index
    %c0 = arith.constant 0 : index
    %0 = vector.load %arg1[%c64, %c0] : memref<200x256xf32, #tpu.memory_space<vmem>>, vector<128x128xf32>
    %c192 = arith.constant 192 : index
    %c0_0 = arith.constant 0 : index
    %1 = vector.load %arg1[%c192, %c0_0] : memref<200x256xf32, #tpu.memory_space<vmem>>, vector<1x128xf32>
    %c0_1 = arith.constant 0 : index
    %c0_2 = arith.constant 0 : index
    %2 = vector.load %arg0[%c0_1, %c0_2] : memref<64x128xf32, #tpu.memory_space<vmem>>, vector<64x128xf32>
    %cst = arith.constant dense<0.000000e+00> : vector<64x128xf32>
    %3 = tpu.matmul %2, %0, %cst {dimension_numbers = #tpu.dot_dimension_numbers<[1], [0], [0], [1], [0, 0, 1, 1], [], []>} : vector<64x128xf32>, vector<128x128xf32>, vector<64x128xf32> -> vector<64x128xf32>
    %4 = vector.broadcast %1 : vector<1x128xf32> to vector<64x128xf32>
    %5 = arith.addf %3, %4 : vector<64x128xf32>
    %c0_3 = arith.constant 0 : index
    %c0_4 = arith.constant 0 : index
    %6 = vector.load %arg3[%c0_3, %c0_4] : memref<64x128xf32, #tpu.memory_space<vmem>>, vector<64x128xf32>
    tpu.vector_store %arg3[%c0_3, %c0_4], %5 {strides = array<i32>} : memref<64x128xf32, #tpu.memory_space<vmem>>, vector<64x128xf32>,
    %c192_5 = arith.constant 192 : index
    %c128 = arith.constant 128 : index
    %7 = vector.load %arg1[%c192_5, %c128] : memref<200x256xf32, #tpu.memory_space<vmem>>, vector<1x128xf32>
    %8 = vector.shape_cast %7 : vector<1x128xf32> to vector<1x128xf32>
    %9 = vector.broadcast %8 : vector<1x128xf32> to vector<8x128xf32>
    %cst_6 = arith.constant 0.000000e+00 : f32
    %10 = vector.broadcast %cst_6 : f32 to vector<8x32xf32>
    %c0_7 = arith.constant 0 : index
    %c0_8 = arith.constant 0 : index
    %11 = vector.load %arg3[%c0_7, %c0_8] : memref<64x128xf32, #tpu.memory_space<vmem>>, vector<8x128xf32>
    %12 = arith.negf %11 : vector<8x128xf32>
    %13 = math.exp %12 : vector<8x128xf32>
    %cst_9 = arith.constant 1.000000e+00 : f32
    %14 = vector.broadcast %cst_9 : f32 to vector<8x128xf32>
    %15 = arith.addf %14, %13 : vector<8x128xf32>
    %16 = arith.divf %14, %15 : vector<8x128xf32>
    %17 = math.tanh %11 : vector<8x128xf32>
    %18 = vector.extract_strided_slice %16 {offsets = [0, 0], sizes = [8, 32], strides = [1, 1]} : vector<8x128xf32> to vector<8x32xf32>
    %19 = vector.extract_strided_slice %16 {offsets = [0, 32], sizes = [8, 32], strides = [1, 1]} : vector<8x128xf32> to vector<8x32xf32>
    %20 = vector.extract_strided_slice %17 {offsets = [0, 64], sizes = [8, 32], strides = [1, 1]} : vector<8x128xf32> to vector<8x32xf32>
    %21 = vector.extract_strided_slice %16 {offsets = [0, 96], sizes = [8, 32], strides = [1, 1]} : vector<8x128xf32> to vector<8x32xf32>
    %22 = arith.mulf %19, %10 : vector<8x32xf32>
    %23 = arith.mulf %18, %20 : vector<8x32xf32>
    %24 = arith.addf %22, %23 : vector<8x32xf32>
    %25 = math.tanh %24 : vector<8x32xf32>
    %26 = arith.mulf %21, %25 : vector<8x32xf32>
    %27 = tpu.concatenate %26, %10 in 1 : vector<8x32xf32>, vector<8x32xf32> -> vector<8x64xf32>
    %c0_10 = arith.constant 0 : index
    %c0_11 = arith.constant 0 : index
    %28 = vector.load %arg1[%c0_10, %c0_11] : memref<200x256xf32, #tpu.memory_space<vmem>>, vector<64x256xf32>
    %cst_12 = arith.constant dense<0.000000e+00> : vector<8x256xf32>
    %29 = tpu.matmul %27, %28, %cst_12 {dimension_numbers = #tpu.dot_dimension_numbers<[1], [0], [0], [1], [0, 0, 1, 1], [], []>} : vector<8x64xf32>, vector<64x256xf32>, vector<8x256xf32> -> vector<8x256xf32>
    %c8 = arith.constant 8 : index
    %c0_13 = arith.constant 0 : index
    %30 = vector.load %arg3[%c8, %c0_13] : memref<64x128xf32, #tpu.memory_space<vmem>>, vector<8x128xf32>
    %31 = vector.extract_strided_slice %29 {offsets = [0, 0], sizes = [8, 128], strides = [1, 1]} : vector<8x256xf32> to vector<8x128xf32>
    %32 = arith.addf %30, %31 : vector<8x128xf32>
    %33 = arith.negf %32 : vector<8x128xf32>
    %34 = math.exp %33 : vector<8x128xf32>
    %cst_14 = arith.constant 1.000000e+00 : f32
    %35 = vector.broadcast %cst_14 : f32 to vector<8x128xf32>
    %36 = arith.addf %35, %34 : vector<8x128xf32>
    %37 = arith.divf %35, %36 : vector<8x128xf32>
    %38 = math.tanh %32 : vector<8x128xf32>
    %39 = vector.extract_strided_slice %37 {offsets = [0, 0], sizes = [8, 32], strides = [1, 1]} : vector<8x128xf32> to vector<8x32xf32>
    %40 = vector.extract_strided_slice %37 {offsets = [0, 32], sizes = [8, 32], strides = [1, 1]} : vector<8x128xf32> to vector<8x32xf32>
    %41 = vector.extract_strided_slice %38 {offsets = [0, 64], sizes = [8, 32], strides = [1, 1]} : vector<8x128xf32> to vector<8x32xf32>
    %42 = vector.extract_strided_slice %37 {offsets = [0, 96], sizes = [8, 32], strides = [1, 1]} : vector<8x128xf32> to vector<8x32xf32>
    %43 = arith.mulf %40, %24 : vector<8x32xf32>
    %44 = arith.mulf %39, %41 : vector<8x32xf32>
    %45 = arith.addf %43, %44 : vector<8x32xf32>
    %46 = math.tanh %45 : vector<8x32xf32>
    %47 = arith.mulf %42, %46 : vector<8x32xf32>
    %48 = vector.extract_strided_slice %29 {offsets = [0, 128], sizes = [8, 128], strides = [1, 1]} : vector<8x256xf32> to vector<8x128xf32>
    %49 = arith.addf %48, %9 : vector<8x128xf32>
    %50 = arith.negf %49 : vector<8x128xf32>
    %51 = math.exp %50 : vector<8x128xf32>
    %cst_15 = arith.constant 1.000000e+00 : f32
    %52 = vector.broadcast %cst_15 : f32 to vector<8x128xf32>
    %53 = arith.addf %52, %51 : vector<8x128xf32>
    %54 = arith.divf %52, %53 : vector<8x128xf32>
    %55 = math.tanh %49 : vector<8x128xf32>
    %56 = vector.extract_strided_slice %54 {offsets = [0, 0], sizes = [8, 32], strides = [1, 1]} : vector<8x128xf32> to vector<8x32xf32>
    %57 = vector.extract_strided_slice %54 {offsets = [0, 32], sizes = [8, 32], strides = [1, 1]} : vector<8x128xf32> to vector<8x32xf32>
    %58 = vector.extract_strided_slice %55 {offsets = [0, 64], sizes = [8, 32], strides = [1, 1]} : vector<8x128xf32> to vector<8x32xf32>
    %59 = vector.extract_strided_slice %54 {offsets = [0, 96], sizes = [8, 32], strides = [1, 1]} : vector<8x128xf32> to vector<8x32xf32>
    %60 = arith.mulf %57, %10 : vector<8x32xf32>
    %61 = arith.mulf %56, %58 : vector<8x32xf32>
    %62 = arith.addf %60, %61 : vector<8x32xf32>
    %63 = math.tanh %62 : vector<8x32xf32>
    %64 = arith.mulf %59, %63 : vector<8x32xf32>
    %65 = tpu.concatenate %47, %64 in 1 : vector<8x32xf32>, vector<8x32xf32> -> vector<8x64xf32>
    %c0_16 = arith.constant 0 : index
    %c0_17 = arith.constant 0 : index
    %66 = vector.load %arg1[%c0_16, %c0_17] : memref<200x256xf32, #tpu.memory_space<vmem>>, vector<64x256xf32>
    %cst_18 = arith.constant dense<0.000000e+00> : vector<8x256xf32>
    %67 = tpu.matmul %65, %66, %cst_18 {dimension_numbers = #tpu.dot_dimension_numbers<[1], [0], [0], [1], [0, 0, 1, 1], [], []>} : vector<8x64xf32>, vector<64x256xf32>, vector<8x256xf32> -> vector<8x256xf32>
    %c16 = arith.constant 16 : index
    %c0_19 = arith.constant 0 : index
    %68 = vector.load %arg3[%c16, %c0_19] : memref<64x128xf32, #tpu.memory_space<vmem>>, vector<8x128xf32>
    %69 = vector.extract_strided_slice %67 {offsets = [0, 0], sizes = [8, 128], strides = [1, 1]} : vector<8x256xf32> to vector<8x128xf32>
    %70 = arith.addf %68, %69 : vector<8x128xf32>
    %71 = arith.negf %70 : vector<8x128xf32>
    %72 = math.exp %71 : vector<8x128xf32>
    %cst_20 = arith.constant 1.000000e+00 : f32
    %73 = vector.broadcast %cst_20 : f32 to vector<8x128xf32>
    %74 = arith.addf %73, %72 : vector<8x128xf32>
    %75 = arith.divf %73, %74 : vector<8x128xf32>
    %76 = math.tanh %70 : vector<8x128xf32>
    %77 = vector.extract_strided_slice %75 {offsets = [0, 0], sizes = [8, 32], strides = [1, 1]} : vector<8x128xf32> to vector<8x32xf32>
    %78 = vector.extract_strided_slice %75 {offsets = [0, 32], sizes = [8, 32], strides = [1, 1]} : vector<8x128xf32> to vector<8x32xf32>
    %79 = vector.extract_strided_slice %76 {offsets = [0, 64], sizes = [8, 32], strides = [1, 1]} : vector<8x128xf32> to vector<8x32xf32>
    %80 = vector.extract_strided_slice %75 {offsets = [0, 96], sizes = [8, 32], strides = [1, 1]} : vector<8x128xf32> to vector<8x32xf32>
    %81 = arith.mulf %78, %45 : vector<8x32xf32>
    %82 = arith.mulf %77, %79 : vector<8x32xf32>
    %83 = arith.addf %81, %82 : vector<8x32xf32>
    %84 = math.tanh %83 : vector<8x32xf32>
    %85 = arith.mulf %80, %84 : vector<8x32xf32>
    %86 = vector.extract_strided_slice %67 {offsets = [0, 128], sizes = [8, 128], strides = [1, 1]} : vector<8x256xf32> to vector<8x128xf32>
    %87 = arith.addf %86, %9 : vector<8x128xf32>
    %88 = arith.negf %87 : vector<8x128xf32>
    %89 = math.exp %88 : vector<8x128xf32>
    %cst_21 = arith.constant 1.000000e+00 : f32
    %90 = vector.broadcast %cst_21 : f32 to vector<8x128xf32>
    %91 = arith.addf %90, %89 : vector<8x128xf32>
    %92 = arith.divf %90, %91 : vector<8x128xf32>
    %93 = math.tanh %87 : vector<8x128xf32>
    %94 = vector.extract_strided_slice %92 {offsets = [0, 0], sizes = [8, 32], strides = [1, 1]} : vector<8x128xf32> to vector<8x32xf32>
    %95 = vector.extract_strided_slice %92 {offsets = [0, 32], sizes = [8, 32], strides = [1, 1]} : vector<8x128xf32> to vector<8x32xf32>
    %96 = vector.extract_strided_slice %93 {offsets = [0, 64], sizes = [8, 32], strides = [1, 1]} : vector<8x128xf32> to vector<8x32xf32>
    %97 = vector.extract_strided_slice %92 {offsets = [0, 96], sizes = [8, 32], strides = [1, 1]} : vector<8x128xf32> to vector<8x32xf32>
    %98 = arith.mulf %95, %62 : vector<8x32xf32>
    %99 = arith.mulf %94, %96 : vector<8x32xf32>
    %100 = arith.addf %98, %99 : vector<8x32xf32>
    %101 = math.tanh %100 : vector<8x32xf32>
    %102 = arith.mulf %97, %101 : vector<8x32xf32>
    %103 = tpu.concatenate %85, %102 in 1 : vector<8x32xf32>, vector<8x32xf32> -> vector<8x64xf32>
    %c0_22 = arith.constant 0 : index
    %c0_23 = arith.constant 0 : index
    %104 = vector.load %arg1[%c0_22, %c0_23] : memref<200x256xf32, #tpu.memory_space<vmem>>, vector<64x256xf32>
    %cst_24 = arith.constant dense<0.000000e+00> : vector<8x256xf32>
    %105 = tpu.matmul %103, %104, %cst_24 {dimension_numbers = #tpu.dot_dimension_numbers<[1], [0], [0], [1], [0, 0, 1, 1], [], []>} : vector<8x64xf32>, vector<64x256xf32>, vector<8x256xf32> -> vector<8x256xf32>
    %c24 = arith.constant 24 : index
    %c0_25 = arith.constant 0 : index
    %106 = vector.load %arg3[%c24, %c0_25] : memref<64x128xf32, #tpu.memory_space<vmem>>, vector<8x128xf32>
    %107 = vector.extract_strided_slice %105 {offsets = [0, 0], sizes = [8, 128], strides = [1, 1]} : vector<8x256xf32> to vector<8x128xf32>
    %108 = arith.addf %106, %107 : vector<8x128xf32>
    %109 = arith.negf %108 : vector<8x128xf32>
    %110 = math.exp %109 : vector<8x128xf32>
    %cst_26 = arith.constant 1.000000e+00 : f32
    %111 = vector.broadcast %cst_26 : f32 to vector<8x128xf32>
    %112 = arith.addf %111, %110 : vector<8x128xf32>
    %113 = arith.divf %111, %112 : vector<8x128xf32>
    %114 = math.tanh %108 : vector<8x128xf32>
    %115 = vector.extract_strided_slice %113 {offsets = [0, 0], sizes = [8, 32], strides = [1, 1]} : vector<8x128xf32> to vector<8x32xf32>
    %116 = vector.extract_strided_slice %113 {offsets = [0, 32], sizes = [8, 32], strides = [1, 1]} : vector<8x128xf32> to vector<8x32xf32>
    %117 = vector.extract_strided_slice %114 {offsets = [0, 64], sizes = [8, 32], strides = [1, 1]} : vector<8x128xf32> to vector<8x32xf32>
    %118 = vector.extract_strided_slice %113 {offsets = [0, 96], sizes = [8, 32], strides = [1, 1]} : vector<8x128xf32> to vector<8x32xf32>
    %119 = arith.mulf %116, %83 : vector<8x32xf32>
    %120 = arith.mulf %115, %117 : vector<8x32xf32>
    %121 = arith.addf %119, %120 : vector<8x32xf32>
    %122 = math.tanh %121 : vector<8x32xf32>
    %123 = arith.mulf %118, %122 : vector<8x32xf32>
    %124 = vector.extract_strided_slice %105 {offsets = [0, 128], sizes = [8, 128], strides = [1, 1]} : vector<8x256xf32> to vector<8x128xf32>
    %125 = arith.addf %124, %9 : vector<8x128xf32>
    %126 = arith.negf %125 : vector<8x128xf32>
    %127 = math.exp %126 : vector<8x128xf32>
    %cst_27 = arith.constant 1.000000e+00 : f32
    %128 = vector.broadcast %cst_27 : f32 to vector<8x128xf32>
    %129 = arith.addf %128, %127 : vector<8x128xf32>
    %130 = arith.divf %128, %129 : vector<8x128xf32>
    %131 = math.tanh %125 : vector<8x128xf32>
    %132 = vector.extract_strided_slice %130 {offsets = [0, 0], sizes = [8, 32], strides = [1, 1]} : vector<8x128xf32> to vector<8x32xf32>
    %133 = vector.extract_strided_slice %130 {offsets = [0, 32], sizes = [8, 32], strides = [1, 1]} : vector<8x128xf32> to vector<8x32xf32>
    %134 = vector.extract_strided_slice %131 {offsets = [0, 64], sizes = [8, 32], strides = [1, 1]} : vector<8x128xf32> to vector<8x32xf32>
    %135 = vector.extract_strided_slice %130 {offsets = [0, 96], sizes = [8, 32], strides = [1, 1]} : vector<8x128xf32> to vector<8x32xf32>
    %136 = arith.mulf %133, %100 : vector<8x32xf32>
    %137 = arith.mulf %132, %134 : vector<8x32xf32>
    %138 = arith.addf %136, %137 : vector<8x32xf32>
    %139 = math.tanh %138 : vector<8x32xf32>
    %140 = arith.mulf %135, %139 : vector<8x32xf32>
    %141 = tpu.concatenate %123, %140 in 1 : vector<8x32xf32>, vector<8x32xf32> -> vector<8x64xf32>
    %c0_28 = arith.constant 0 : index
    %c0_29 = arith.constant 0 : index
    %142 = vector.load %arg1[%c0_28, %c0_29] : memref<200x256xf32, #tpu.memory_space<vmem>>, vector<64x256xf32>
    %cst_30 = arith.constant dense<0.000000e+00> : vector<8x256xf32>
    %143 = tpu.matmul %141, %142, %cst_30 {dimension_numbers = #tpu.dot_dimension_numbers<[1], [0], [0], [1], [0, 0, 1, 1], [], []>} : vector<8x64xf32>, vector<64x256xf32>, vector<8x256xf32> -> vector<8x256xf32>
    %c32 = arith.constant 32 : index
    %c0_31 = arith.constant 0 : index
    %144 = vector.load %arg3[%c32, %c0_31] : memref<64x128xf32, #tpu.memory_space<vmem>>, vector<8x128xf32>
    %145 = vector.extract_strided_slice %143 {offsets = [0, 0], sizes = [8, 128], strides = [1, 1]} : vector<8x256xf32> to vector<8x128xf32>
    %146 = arith.addf %144, %145 : vector<8x128xf32>
    %147 = arith.negf %146 : vector<8x128xf32>
    %148 = math.exp %147 : vector<8x128xf32>
    %cst_32 = arith.constant 1.000000e+00 : f32
    %149 = vector.broadcast %cst_32 : f32 to vector<8x128xf32>
    %150 = arith.addf %149, %148 : vector<8x128xf32>
    %151 = arith.divf %149, %150 : vector<8x128xf32>
    %152 = math.tanh %146 : vector<8x128xf32>
    %153 = vector.extract_strided_slice %151 {offsets = [0, 0], sizes = [8, 32], strides = [1, 1]} : vector<8x128xf32> to vector<8x32xf32>
    %154 = vector.extract_strided_slice %151 {offsets = [0, 32], sizes = [8, 32], strides = [1, 1]} : vector<8x128xf32> to vector<8x32xf32>
    %155 = vector.extract_strided_slice %152 {offsets = [0, 64], sizes = [8, 32], strides = [1, 1]} : vector<8x128xf32> to vector<8x32xf32>
    %156 = vector.extract_strided_slice %151 {offsets = [0, 96], sizes = [8, 32], strides = [1, 1]} : vector<8x128xf32> to vector<8x32xf32>
    %157 = arith.mulf %154, %121 : vector<8x32xf32>
    %158 = arith.mulf %153, %155 : vector<8x32xf32>
    %159 = arith.addf %157, %158 : vector<8x32xf32>
    %160 = math.tanh %159 : vector<8x32xf32>
    %161 = arith.mulf %156, %160 : vector<8x32xf32>
    %162 = vector.extract_strided_slice %143 {offsets = [0, 128], sizes = [8, 128], strides = [1, 1]} : vector<8x256xf32> to vector<8x128xf32>
    %163 = arith.addf %162, %9 : vector<8x128xf32>
    %164 = arith.negf %163 : vector<8x128xf32>
    %165 = math.exp %164 : vector<8x128xf32>
    %cst_33 = arith.constant 1.000000e+00 : f32
    %166 = vector.broadcast %cst_33 : f32 to vector<8x128xf32>
    %167 = arith.addf %166, %165 : vector<8x128xf32>
    %168 = arith.divf %166, %167 : vector<8x128xf32>
    %169 = math.tanh %163 : vector<8x128xf32>
    %170 = vector.extract_strided_slice %168 {offsets = [0, 0], sizes = [8, 32], strides = [1, 1]} : vector<8x128xf32> to vector<8x32xf32>
    %171 = vector.extract_strided_slice %168 {offsets = [0, 32], sizes = [8, 32], strides = [1, 1]} : vector<8x128xf32> to vector<8x32xf32>
    %172 = vector.extract_strided_slice %169 {offsets = [0, 64], sizes = [8, 32], strides = [1, 1]} : vector<8x128xf32> to vector<8x32xf32>
    %173 = vector.extract_strided_slice %168 {offsets = [0, 96], sizes = [8, 32], strides = [1, 1]} : vector<8x128xf32> to vector<8x32xf32>
    %174 = arith.mulf %171, %138 : vector<8x32xf32>
    %175 = arith.mulf %170, %172 : vector<8x32xf32>
    %176 = arith.addf %174, %175 : vector<8x32xf32>
    %177 = math.tanh %176 : vector<8x32xf32>
    %178 = arith.mulf %173, %177 : vector<8x32xf32>
    %179 = tpu.concatenate %161, %178 in 1 : vector<8x32xf32>, vector<8x32xf32> -> vector<8x64xf32>
    %c0_34 = arith.constant 0 : index
    %c0_35 = arith.constant 0 : index
    %180 = vector.load %arg1[%c0_34, %c0_35] : memref<200x256xf32, #tpu.memory_space<vmem>>, vector<64x256xf32>
    %cst_36 = arith.constant dense<0.000000e+00> : vector<8x256xf32>
    %181 = tpu.matmul %179, %180, %cst_36 {dimension_numbers = #tpu.dot_dimension_numbers<[1], [0], [0], [1], [0, 0, 1, 1], [], []>} : vector<8x64xf32>, vector<64x256xf32>, vector<8x256xf32> -> vector<8x256xf32>
    %c40 = arith.constant 40 : index
    %c0_37 = arith.constant 0 : index
    %182 = vector.load %arg3[%c40, %c0_37] : memref<64x128xf32, #tpu.memory_space<vmem>>, vector<8x128xf32>
    %183 = vector.extract_strided_slice %181 {offsets = [0, 0], sizes = [8, 128], strides = [1, 1]} : vector<8x256xf32> to vector<8x128xf32>
    %184 = arith.addf %182, %183 : vector<8x128xf32>
    %185 = arith.negf %184 : vector<8x128xf32>
    %186 = math.exp %185 : vector<8x128xf32>
    %cst_38 = arith.constant 1.000000e+00 : f32
    %187 = vector.broadcast %cst_38 : f32 to vector<8x128xf32>
    %188 = arith.addf %187, %186 : vector<8x128xf32>
    %189 = arith.divf %187, %188 : vector<8x128xf32>
    %190 = math.tanh %184 : vector<8x128xf32>
    %191 = vector.extract_strided_slice %189 {offsets = [0, 0], sizes = [8, 32], strides = [1, 1]} : vector<8x128xf32> to vector<8x32xf32>
    %192 = vector.extract_strided_slice %189 {offsets = [0, 32], sizes = [8, 32], strides = [1, 1]} : vector<8x128xf32> to vector<8x32xf32>
    %193 = vector.extract_strided_slice %190 {offsets = [0, 64], sizes = [8, 32], strides = [1, 1]} : vector<8x128xf32> to vector<8x32xf32>
    %194 = vector.extract_strided_slice %189 {offsets = [0, 96], sizes = [8, 32], strides = [1, 1]} : vector<8x128xf32> to vector<8x32xf32>
    %195 = arith.mulf %192, %159 : vector<8x32xf32>
    %196 = arith.mulf %191, %193 : vector<8x32xf32>
    %197 = arith.addf %195, %196 : vector<8x32xf32>
    %198 = math.tanh %197 : vector<8x32xf32>
    %199 = arith.mulf %194, %198 : vector<8x32xf32>
    %200 = vector.extract_strided_slice %181 {offsets = [0, 128], sizes = [8, 128], strides = [1, 1]} : vector<8x256xf32> to vector<8x128xf32>
    %201 = arith.addf %200, %9 : vector<8x128xf32>
    %202 = arith.negf %201 : vector<8x128xf32>
    %203 = math.exp %202 : vector<8x128xf32>
    %cst_39 = arith.constant 1.000000e+00 : f32
    %204 = vector.broadcast %cst_39 : f32 to vector<8x128xf32>
    %205 = arith.addf %204, %203 : vector<8x128xf32>
    %206 = arith.divf %204, %205 : vector<8x128xf32>
    %207 = math.tanh %201 : vector<8x128xf32>
    %208 = vector.extract_strided_slice %206 {offsets = [0, 0], sizes = [8, 32], strides = [1, 1]} : vector<8x128xf32> to vector<8x32xf32>
    %209 = vector.extract_strided_slice %206 {offsets = [0, 32], sizes = [8, 32], strides = [1, 1]} : vector<8x128xf32> to vector<8x32xf32>
    %210 = vector.extract_strided_slice %207 {offsets = [0, 64], sizes = [8, 32], strides = [1, 1]} : vector<8x128xf32> to vector<8x32xf32>
    %211 = vector.extract_strided_slice %206 {offsets = [0, 96], sizes = [8, 32], strides = [1, 1]} : vector<8x128xf32> to vector<8x32xf32>
    %212 = arith.mulf %209, %176 : vector<8x32xf32>
    %213 = arith.mulf %208, %210 : vector<8x32xf32>
    %214 = arith.addf %212, %213 : vector<8x32xf32>
    %215 = math.tanh %214 : vector<8x32xf32>
    %216 = arith.mulf %211, %215 : vector<8x32xf32>
    %217 = tpu.concatenate %199, %216 in 1 : vector<8x32xf32>, vector<8x32xf32> -> vector<8x64xf32>
    %c0_40 = arith.constant 0 : index
    %c0_41 = arith.constant 0 : index
    %218 = vector.load %arg1[%c0_40, %c0_41] : memref<200x256xf32, #tpu.memory_space<vmem>>, vector<64x256xf32>
    %cst_42 = arith.constant dense<0.000000e+00> : vector<8x256xf32>
    %219 = tpu.matmul %217, %218, %cst_42 {dimension_numbers = #tpu.dot_dimension_numbers<[1], [0], [0], [1], [0, 0, 1, 1], [], []>} : vector<8x64xf32>, vector<64x256xf32>, vector<8x256xf32> -> vector<8x256xf32>
    %c48 = arith.constant 48 : index
    %c0_43 = arith.constant 0 : index
    %220 = vector.load %arg3[%c48, %c0_43] : memref<64x128xf32, #tpu.memory_space<vmem>>, vector<8x128xf32>
    %221 = vector.extract_strided_slice %219 {offsets = [0, 0], sizes = [8, 128], strides = [1, 1]} : vector<8x256xf32> to vector<8x128xf32>
    %222 = arith.addf %220, %221 : vector<8x128xf32>
    %223 = arith.negf %222 : vector<8x128xf32>
    %224 = math.exp %223 : vector<8x128xf32>
    %cst_44 = arith.constant 1.000000e+00 : f32
    %225 = vector.broadcast %cst_44 : f32 to vector<8x128xf32>
    %226 = arith.addf %225, %224 : vector<8x128xf32>
    %227 = arith.divf %225, %226 : vector<8x128xf32>
    %228 = math.tanh %222 : vector<8x128xf32>
    %229 = vector.extract_strided_slice %227 {offsets = [0, 0], sizes = [8, 32], strides = [1, 1]} : vector<8x128xf32> to vector<8x32xf32>
    %230 = vector.extract_strided_slice %227 {offsets = [0, 32], sizes = [8, 32], strides = [1, 1]} : vector<8x128xf32> to vector<8x32xf32>
    %231 = vector.extract_strided_slice %228 {offsets = [0, 64], sizes = [8, 32], strides = [1, 1]} : vector<8x128xf32> to vector<8x32xf32>
    %232 = vector.extract_strided_slice %227 {offsets = [0, 96], sizes = [8, 32], strides = [1, 1]} : vector<8x128xf32> to vector<8x32xf32>
    %233 = arith.mulf %230, %197 : vector<8x32xf32>
    %234 = arith.mulf %229, %231 : vector<8x32xf32>
    %235 = arith.addf %233, %234 : vector<8x32xf32>
    %236 = math.tanh %235 : vector<8x32xf32>
    %237 = arith.mulf %232, %236 : vector<8x32xf32>
    %238 = vector.extract_strided_slice %219 {offsets = [0, 128], sizes = [8, 128], strides = [1, 1]} : vector<8x256xf32> to vector<8x128xf32>
    %239 = arith.addf %238, %9 : vector<8x128xf32>
    %240 = arith.negf %239 : vector<8x128xf32>
    %241 = math.exp %240 : vector<8x128xf32>
    %cst_45 = arith.constant 1.000000e+00 : f32
    %242 = vector.broadcast %cst_45 : f32 to vector<8x128xf32>
    %243 = arith.addf %242, %241 : vector<8x128xf32>
    %244 = arith.divf %242, %243 : vector<8x128xf32>
    %245 = math.tanh %239 : vector<8x128xf32>
    %246 = vector.extract_strided_slice %244 {offsets = [0, 0], sizes = [8, 32], strides = [1, 1]} : vector<8x128xf32> to vector<8x32xf32>
    %247 = vector.extract_strided_slice %244 {offsets = [0, 32], sizes = [8, 32], strides = [1, 1]} : vector<8x128xf32> to vector<8x32xf32>
    %248 = vector.extract_strided_slice %245 {offsets = [0, 64], sizes = [8, 32], strides = [1, 1]} : vector<8x128xf32> to vector<8x32xf32>
    %249 = vector.extract_strided_slice %244 {offsets = [0, 96], sizes = [8, 32], strides = [1, 1]} : vector<8x128xf32> to vector<8x32xf32>
    %250 = arith.mulf %247, %214 : vector<8x32xf32>
    %251 = arith.mulf %246, %248 : vector<8x32xf32>
    %252 = arith.addf %250, %251 : vector<8x32xf32>
    %253 = math.tanh %252 : vector<8x32xf32>
    %254 = arith.mulf %249, %253 : vector<8x32xf32>
    %255 = tpu.concatenate %237, %254 in 1 : vector<8x32xf32>, vector<8x32xf32> -> vector<8x64xf32>
    %c0_46 = arith.constant 0 : index
    %c0_47 = arith.constant 0 : index
    %256 = vector.load %arg1[%c0_46, %c0_47] : memref<200x256xf32, #tpu.memory_space<vmem>>, vector<64x256xf32>
    %cst_48 = arith.constant dense<0.000000e+00> : vector<8x256xf32>
    %257 = tpu.matmul %255, %256, %cst_48 {dimension_numbers = #tpu.dot_dimension_numbers<[1], [0], [0], [1], [0, 0, 1, 1], [], []>} : vector<8x64xf32>, vector<64x256xf32>, vector<8x256xf32> -> vector<8x256xf32>
    %c56 = arith.constant 56 : index
    %c0_49 = arith.constant 0 : index
    %258 = vector.load %arg3[%c56, %c0_49] : memref<64x128xf32, #tpu.memory_space<vmem>>, vector<8x128xf32>
    %259 = vector.extract_strided_slice %257 {offsets = [0, 0], sizes = [8, 128], strides = [1, 1]} : vector<8x256xf32> to vector<8x128xf32>
    %260 = arith.addf %258, %259 : vector<8x128xf32>
    %261 = arith.negf %260 : vector<8x128xf32>
    %262 = math.exp %261 : vector<8x128xf32>
    %cst_50 = arith.constant 1.000000e+00 : f32
    %263 = vector.broadcast %cst_50 : f32 to vector<8x128xf32>
    %264 = arith.addf %263, %262 : vector<8x128xf32>
    %265 = arith.divf %263, %264 : vector<8x128xf32>
    %266 = math.tanh %260 : vector<8x128xf32>
    %267 = vector.extract_strided_slice %265 {offsets = [0, 0], sizes = [8, 32], strides = [1, 1]} : vector<8x128xf32> to vector<8x32xf32>
    %268 = vector.extract_strided_slice %265 {offsets = [0, 32], sizes = [8, 32], strides = [1, 1]} : vector<8x128xf32> to vector<8x32xf32>
    %269 = vector.extract_strided_slice %266 {offsets = [0, 64], sizes = [8, 32], strides = [1, 1]} : vector<8x128xf32> to vector<8x32xf32>
    %270 = vector.extract_strided_slice %265 {offsets = [0, 96], sizes = [8, 32], strides = [1, 1]} : vector<8x128xf32> to vector<8x32xf32>
    %271 = arith.mulf %268, %235 : vector<8x32xf32>
    %272 = arith.mulf %267, %269 : vector<8x32xf32>
    %273 = arith.addf %271, %272 : vector<8x32xf32>
    %274 = math.tanh %273 : vector<8x32xf32>
    %275 = arith.mulf %270, %274 : vector<8x32xf32>
    %276 = vector.extract_strided_slice %257 {offsets = [0, 128], sizes = [8, 128], strides = [1, 1]} : vector<8x256xf32> to vector<8x128xf32>
    %277 = arith.addf %276, %9 : vector<8x128xf32>
    %278 = arith.negf %277 : vector<8x128xf32>
    %279 = math.exp %278 : vector<8x128xf32>
    %cst_51 = arith.constant 1.000000e+00 : f32
    %280 = vector.broadcast %cst_51 : f32 to vector<8x128xf32>
    %281 = arith.addf %280, %279 : vector<8x128xf32>
    %282 = arith.divf %280, %281 : vector<8x128xf32>
    %283 = math.tanh %277 : vector<8x128xf32>
    %284 = vector.extract_strided_slice %282 {offsets = [0, 0], sizes = [8, 32], strides = [1, 1]} : vector<8x128xf32> to vector<8x32xf32>
    %285 = vector.extract_strided_slice %282 {offsets = [0, 32], sizes = [8, 32], strides = [1, 1]} : vector<8x128xf32> to vector<8x32xf32>
    %286 = vector.extract_strided_slice %283 {offsets = [0, 64], sizes = [8, 32], strides = [1, 1]} : vector<8x128xf32> to vector<8x32xf32>
    %287 = vector.extract_strided_slice %282 {offsets = [0, 96], sizes = [8, 32], strides = [1, 1]} : vector<8x128xf32> to vector<8x32xf32>
    %288 = arith.mulf %285, %252 : vector<8x32xf32>
    %289 = arith.mulf %284, %286 : vector<8x32xf32>
    %290 = arith.addf %288, %289 : vector<8x32xf32>
    %291 = math.tanh %290 : vector<8x32xf32>
    %292 = arith.mulf %287, %291 : vector<8x32xf32>
    %293 = tpu.concatenate %275, %292 in 1 : vector<8x32xf32>, vector<8x32xf32> -> vector<8x64xf32>
    %c0_52 = arith.constant 0 : index
    %c128_53 = arith.constant 128 : index
    %294 = vector.load %arg1[%c0_52, %c128_53] : memref<200x256xf32, #tpu.memory_space<vmem>>, vector<64x128xf32>
    %cst_54 = arith.constant dense<0.000000e+00> : vector<8x128xf32>
    %295 = tpu.matmul %293, %294, %cst_54 {dimension_numbers = #tpu.dot_dimension_numbers<[1], [0], [0], [1], [0, 0, 1, 1], [], []>} : vector<8x64xf32>, vector<64x128xf32>, vector<8x128xf32> -> vector<8x128xf32>
    %296 = arith.addf %295, %9 : vector<8x128xf32>
    %297 = arith.negf %296 : vector<8x128xf32>
    %298 = math.exp %297 : vector<8x128xf32>
    %cst_55 = arith.constant 1.000000e+00 : f32
    %299 = vector.broadcast %cst_55 : f32 to vector<8x128xf32>
    %300 = arith.addf %299, %298 : vector<8x128xf32>
    %301 = arith.divf %299, %300 : vector<8x128xf32>
    %302 = math.tanh %296 : vector<8x128xf32>
    %303 = vector.extract_strided_slice %301 {offsets = [0, 0], sizes = [8, 32], strides = [1, 1]} : vector<8x128xf32> to vector<8x32xf32>
    %304 = vector.extract_strided_slice %301 {offsets = [0, 32], sizes = [8, 32], strides = [1, 1]} : vector<8x128xf32> to vector<8x32xf32>
    %305 = vector.extract_strided_slice %302 {offsets = [0, 64], sizes = [8, 32], strides = [1, 1]} : vector<8x128xf32> to vector<8x32xf32>
    %306 = vector.extract_strided_slice %301 {offsets = [0, 96], sizes = [8, 32], strides = [1, 1]} : vector<8x128xf32> to vector<8x32xf32>
    %307 = arith.mulf %304, %290 : vector<8x32xf32>
    %308 = arith.mulf %303, %305 : vector<8x32xf32>
    %309 = arith.addf %307, %308 : vector<8x32xf32>
    %310 = math.tanh %309 : vector<8x32xf32>
    %311 = arith.mulf %306, %310 : vector<8x32xf32>
    %c193 = arith.constant 193 : index
    %c0_56 = arith.constant 0 : index
    %312 = vector.load %arg1[%c193, %c0_56] : memref<200x256xf32, #tpu.memory_space<vmem>>, vector<1x32xf32>
    %c193_57 = arith.constant 193 : index
    %c32_58 = arith.constant 32 : index
    %313 = vector.load %arg1[%c193_57, %c32_58] : memref<200x256xf32, #tpu.memory_space<vmem>>, vector<1x1xf32>
    %314 = vector.broadcast %312 : vector<1x32xf32> to vector<8x32xf32>
    %315 = arith.mulf %311, %314 : vector<8x32xf32>
    %cst_59 = arith.constant dense<0.000000e+00> : vector<8xf32>
    %316 = vector.multi_reduction <add>, %315, %cst_59 [1] : vector<8x32xf32> to vector<8xf32>
    %317 = vector.shape_cast %316 : vector<8xf32> to vector<8x1xf32>
    %318 = vector.broadcast %313 : vector<1x1xf32> to vector<8x1xf32>
    %319 = arith.addf %317, %318 : vector<8x1xf32>
    %320 = arith.negf %319 : vector<8x1xf32>
    %321 = math.exp %320 : vector<8x1xf32>
    %cst_60 = arith.constant 1.000000e+00 : f32
    %322 = vector.broadcast %cst_60 : f32 to vector<8x1xf32>
    %323 = arith.addf %322, %321 : vector<8x1xf32>
    %324 = arith.divf %322, %323 : vector<8x1xf32>
    %c0_61 = arith.constant 0 : index
    %c0_62 = arith.constant 0 : index
    %325 = vector.load %arg2[%c0_61, %c0_62] : memref<8x1xf32, #tpu.memory_space<vmem>>, vector<8x1xf32>
    tpu.vector_store %arg2[%c0_61, %c0_62], %324 {strides = array<i32>} : memref<8x1xf32, #tpu.memory_space<vmem>>, vector<8x1xf32>,
    return
  }
}

</mosaic_0001>

<bundles_post_ra>
// kernel: lstm_model_forward.1
= control target key start
LH: loop header
LB: loop body
LE: loop exit
PB: predicated region body
PF: predicated region fallthrough
CT: control target
= control target key end

     0   :  { %s1521_s19 = smov 64   ;;  %s1522_s20 = smov 32   ;;  %v1523_v49 = vmov 0.0   ;;  %vm179_vm0 = vcmask 261120   ;;  %vm197_vm1 = vcmask 523264   ;;  %vm1524_vm2 = vmmov 0   ;;  %s2009_s1 = inlined_call_operand.vmem [shape: f32[200,256], index: 1, kind: input, shape index: {}]   ;;  %s2010_s0 = inlined_call_operand.vmem [shape: f32[64,128], index: 0, kind: input, shape index: {}]   ;;  %s2011_s2 = inlined_call_operand.vmem [shape: f32[8,1], index: 2, kind: output, shape index: {}]  }
   0x1   :  { %v26_v0 = vld [vmem:[%s2009_s1 + $0x170] sm:$0xff]  ;;  %v25_v1 = vld [vmem:[%s2009_s1 + $0x160] sm:$0xff]  ;;  %v29_v17 = vld [vmem:[%s2010_s0 + $0x8] sm:$0xff]  ;;  %265 = vmatprep.mubr.f32.mxu1 %v1523_v49  ;;  %s1525_s14 = smov 96   ;;  %vm1257_vm3 = vcmask 7168  }
   0x2   :  { %1321 = vmatprep.subr.mxu0 %v26_v0  ;;  %v24_v2 = vld [vmem:[%s2009_s1 + $0x150] sm:$0xff]  ;;  %v23_v3 = vld [vmem:[%s2009_s1 + $0x140] sm:$0xff]  ;;  %v1615_v32 = vld [vmem:[%s2009_s1 + $0x78] sm:$0xff] }
   0x3   :  { %1322 = vmatpush3.msra.mxu0 %v26_v0  ;;  %v28_v4 = vld [vmem:[%s2010_s0] sm:$0xff]  ;;  %v22_v5 = vld [vmem:[%s2009_s1 + $0x130] sm:$0xff]  ;;  %v1625_v34 = vld [vmem:[%s2009_s1 + $0x68] sm:$0xff]  ;;  %217 = vmatprep.subr.mxu1 %v1615_v32 }
   0x4   :  { %1323 = vmatprep.subr.mxu0 %v25_v1  ;;  %1353 = vmatprep.mubr.f32.mxu0 %v28_v4  ;;  %v21_v6 = vld [vmem:[%s2009_s1 + $0x120] sm:$0xff]  ;;  %v20_v7 = vld [vmem:[%s2009_s1 + $0x110] sm:$0xff]  ;;  %v1638_v36 = vld [vmem:[%s2009_s1 + $0x58] sm:$0xff] }
   0x5   :  { %1324 = vmatpush3.msra.mxu0 %v25_v1  ;;  %v19_v8 = vld [vmem:[%s2009_s1 + $0x100] sm:$0xff]  ;;  %v18_v9 = vld [vmem:[%s2009_s1 + $0xf0] sm:$0xff]  ;;  %v1652_v38 = vld [vmem:[%s2009_s1 + $0x48] sm:$0xff] }
   0x6   :  { %1325 = vmatprep.subr.mxu0 %v24_v2  ;;  %v17_v10 = vld [vmem:[%s2009_s1 + $0xe0] sm:$0xff]  ;;  %v16_v11 = vld [vmem:[%s2009_s1 + $0xd0] sm:$0xff]  ;;  %v1666_v40 = vld [vmem:[%s2009_s1 + $0x38] sm:$0xff] }
   0x7   :  { %1326 = vmatpush3.msra.mxu0 %v24_v2  ;;  %v15_v12 = vld [vmem:[%s2009_s1 + $0xc0] sm:$0xff]  ;;  %v14_v13 = vld [vmem:[%s2009_s1 + $0xb0] sm:$0xff]  ;;  %v1680_v42 = vld [vmem:[%s2009_s1 + $0x28] sm:$0xff] }
   0x8   :  { %1327 = vmatprep.subr.mxu0 %v23_v3  ;;  %v13_v14 = vld [vmem:[%s2009_s1 + $0xa0] sm:$0xff]  ;;  %v12_v15 = vld [vmem:[%s2009_s1 + $0x90] sm:$0xff]  ;;  %v1694_v45 = vld [vmem:[%s2009_s1 + $0x18] sm:$0xff] }
   0x9   :  { %1328 = vmatpush3.msra.mxu0 %v23_v3  ;;  %v11_v16 = vld [vmem:[%s2009_s1 + $0x80] sm:$0xff]  ;;  %v1620_v33 = vld [vmem:[%s2009_s1 + $0x70] sm:$0xff]  ;;  %v1708_v47 = vld [vmem:[%s2009_s1 + $0x8] sm:$0xff] }
   0xa   :  { %1329 = vmatprep.subr.mxu0 %v22_v5  ;;  %v1600_v19 = vld [vmem:[%s2009_s1 + $0x180] ss:$0 sm:$0xff]  ;;  %218 = vmatpush1.msra.mxu1 %v1620_v33  ;;  %v1645_v37 = vld [vmem:[%s2009_s1 + $0x50] sm:$0xff]  ;;  %v1754_v56 = vld [vmem:[%s2009_s1 + $0x188] ss:$0 sm:$0xff] }
   0xb   :  { %1330 = vmatpush3.msra.mxu0 %v22_v5  ;;  %v1631_v35 = vld [vmem:[%s2009_s1 + $0x60] sm:$0xff]  ;;  %219 = vmatprep.subr.mxu1 %v1625_v34  ;;  %v1673_v41 = vld [vmem:[%s2009_s1 + $0x30] sm:$0xff] }
   0xc   :  { %1331 = vmatprep.subr.mxu0 %v21_v6  ;;  %220 = vmatpush1.msra.mxu1 %v1631_v35  ;;  %v1659_v39 = vld [vmem:[%s2009_s1 + $0x40] sm:$0xff]  ;;  %v1702_v46 = vld [vmem:[%s2009_s1 + $0x10] sm:$0xff] }
   0xd   :  { %1332 = vmatpush3.msra.mxu0 %v21_v6  ;;  %221 = vmatprep.subr.mxu1 %v1638_v36  ;;  %v1687_v43 = vld [vmem:[%s2009_s1 + $0x20] sm:$0xff] }
   0xe   :  { %1333 = vmatprep.subr.mxu0 %v20_v7  ;;  %222 = vmatpush1.msra.mxu1 %v1645_v37  ;;  %v1721_v48 = vld [vmem:[%s2009_s1] sm:$0xff] }
   0xf   :  { %1334 = vmatpush3.msra.mxu0 %v20_v7  ;;  %223 = vmatprep.subr.mxu1 %v1652_v38 }
  0x10   :  { %1335 = vmatprep.subr.mxu0 %v19_v8  ;;  %224 = vmatpush1.msra.mxu1 %v1659_v39 }
  0x11   :  { %1336 = vmatpush3.msra.mxu0 %v19_v8  ;;  %225 = vmatprep.subr.mxu1 %v1666_v40 }
  0x12   :  { %1337 = vmatprep.subr.mxu0 %v18_v9  ;;  %226 = vmatpush1.msra.mxu1 %v1673_v41 }
  0x13   :  { %1338 = vmatpush3.msra.mxu0 %v18_v9  ;;  %227 = vmatprep.subr.mxu1 %v1680_v42 }
  0x14   :  { %1339 = vmatprep.subr.mxu0 %v17_v10  ;;  %228 = vmatpush1.msra.mxu1 %v1687_v43 }
  0x15   :  { %1340 = vmatpush3.msra.mxu0 %v17_v10  ;;  %229 = vmatprep.subr.mxu1 %v1694_v45 }
  0x16   :  { %1341 = vmatprep.subr.mxu0 %v16_v11  ;;  %230 = vmatpush1.msra.mxu1 %v1702_v46 }
  0x17   :  { %1342 = vmatpush3.msra.mxu0 %v16_v11  ;;  %231 = vmatprep.subr.mxu1 %v1708_v47 }
  0x18   :  { %1343 = vmatprep.subr.mxu0 %v15_v12  ;;  %232 = vmatpush1.msra.mxu1 %v1721_v48 }
  0x19   :  { %1344 = vmatpush3.msra.mxu0 %v15_v12  ;;  %351 = vmatprep.subr.mxu1 %v1615_v32 }
  0x1a   :  { %1345 = vmatprep.subr.mxu0 %v14_v13 }
  0x1b   :  { %1346 = vmatpush3.msra.mxu0 %v14_v13 }
  0x1c   :  { %1347 = vmatprep.subr.mxu0 %v13_v14 }
  0x1d   :  { %1348 = vmatpush3.msra.mxu0 %v13_v14 }
  0x1e   :  { %1349 = vmatprep.subr.mxu0 %v12_v15 }
  0x1f   :  { %1350 = vmatpush3.msra.mxu0 %v12_v15 }
  0x20   :  { %1351 = vmatprep.subr.mxu0 %v11_v16 }
  0x21   :  { %1352 = vmatpush3.msra.mxu0 %v11_v16  ;;  %v30_v16 = vld [vmem:[%s2010_s0 + $0x10] sm:$0xff] }
  0x22   :  { %1354 = vmatmul.mubr.f32.vlgmr.msra.gmra.mxu0 %v29_v17  ;;  %485 = vmatprep.subr.mxu0 %v1615_v32  ;;  %v31_v17 = vld [vmem:[%s2010_s0 + $0x18] sm:$0xff] }
  0x23   :  { %486 = vmatpush1.msra.mxu0 %v1620_v33  ;;  %1356 = vmatprep.mubr.f32.mxu0 %v30_v16 }
  0x24   :  { %487 = vmatprep.subr.mxu0 %v1625_v34 }
  0x25   :  { %488 = vmatpush1.msra.mxu0 %v1631_v35 }
  0x26   :  { %489 = vmatprep.subr.mxu0 %v1638_v36  ;;  %1357 = vmatmul.mubr.f32.gmra.mxu0 %v31_v17 }
  0x27   :  { %490 = vmatpush1.msra.mxu0 %v1645_v37 }
  0x28   :  { %491 = vmatprep.subr.mxu0 %v1652_v38 }
  0x29   :  { %492 = vmatpush1.msra.mxu0 %v1659_v39 }
  0x2a   :  { %493 = vmatprep.subr.mxu0 %v1666_v40 }
  0x2b   :  { %494 = vmatpush1.msra.mxu0 %v1673_v41 }
  0x2c   :  { %495 = vmatprep.subr.mxu0 %v1680_v42 }
  0x2d   :  { %496 = vmatpush1.msra.mxu0 %v1687_v43 }
  0x2e   :  { %497 = vmatprep.subr.mxu0 %v1694_v45 }
  0x2f   :  { %498 = vmatpush1.msra.mxu0 %v1702_v46 }
  0x30   :  { %499 = vmatprep.subr.mxu0 %v1708_v47 }
  0x31   :  { %500 = vmatpush1.msra.mxu0 %v1721_v48 }
  0x32   :  { %753 = vmatprep.subr.mxu0 %v1615_v32 }
  0xe2   :  { %v1595_v18 = vpop.f32.mrf.mxu0 }
  0xe3   :  { %v108_v54 = vadd.f32 %v1595_v18, %v1600_v19 }
  0xe4   :  { %v102_v20 = vpop.f32.mrf.mxu0 }
  0xe5   :  { %v103_v21 = vadd.f32 %v102_v20, %v1600_v19 }
  0xe7   :  { %1389 = vtanh.f32 %v103_v21  ;;  %v1263_v23 = vmul.f32 -1.442695, %v103_v21 }
  0xe9   :  { %1391 = vpow2.f32 %v1263_v23 }
  0xf4   :  { %v1390_v22 = vpop.eup %1389 }
  0xf5   :  { %160 = vrot.lane.b32.xlu0 %v1390_v22, %s1521_s19 }
  0xf6   :  { %v1392_v24 = vpop.eup %1391 }
  0xf7   :  { %v154_v25 = vadd.f32 1.0, %v1392_v24 }
  0xf9   :  { %1393 = vrcp.f32 %v154_v25 }
 0x106   :  { %v1604_v26 = vpop.eup %1393 }
 0x107   :  { %v158_v29 = vmul.f32 0.0, %v1604_v26 }
 0x167   :  { %v161_v27 = vpop.permute.xlu0 %160 }
 0x168   :  { %v163_v28 = vmul.f32 %v1604_v26, %v161_v27 }
 0x16a   :  { %165 = vrot.lane.b32.xlu0 %v163_v28, %s1522_s20  ;;  %v1797_v28 = vpop.f32.mrf.mxu0 }
 0x1dc   :  { %v166_v30 = vpop.permute.xlu0 %165 }
 0x1dd   :  { %v1609_v31 = vadd.f32 %v166_v30, %v158_v29  ;;  %v112_v29 = vpop.f32.mrf.mxu0 }
 0x1de   :  { %v113_v30 = vadd.f32 %v112_v29, %v1600_v19 }
 0x1df   :  { %1395 = vtanh.f32 %v1609_v31 }
 0x1ec   :  { %v1396_v44 = vpop.eup %1395 }
 0x1ed   :  { %171 = vrot.lane.b32.xlu1 %v1396_v44, %s1521_s19 }
 0x25f   :  { %v172_v50 = vpop.permute.xlu1 %171 }
 0x260   :  { %v174_v51 = vmul.f32 %v1604_v26, %v172_v50 }
 0x262   :  { %176 = vrot.lane.b32.xlu1 %v174_v51, %s1522_s20 }
 0x2d4   :  { %v177_v52 = vpop.permute.xlu1 %176 }
 0x2d5   :  { %v180_v53 = vsel %vm179_vm0, %v177_v52, 0.0 }
 0x2d6   :  { %1264 = vmatmul.mubr.msk.f32.vlgmr.msra.gmra.mxu1 %vm197_vm1, %v180_v53 }
 0x2d7   :  { %352 = vmatpush1.msra.mxu1 %v1620_v33  ;;  %399 = vmatprep.mubr.f32.mxu1 %v1523_v49 }
 0x2d8   :  { %353 = vmatprep.subr.mxu1 %v1625_v34 }
 0x2d9   :  { %354 = vmatpush1.msra.mxu1 %v1631_v35 }
 0x2da   :  { %355 = vmatprep.subr.mxu1 %v1638_v36 }
 0x2db   :  { %356 = vmatpush1.msra.mxu1 %v1645_v37 }
 0x2dc   :  { %357 = vmatprep.subr.mxu1 %v1652_v38 }
 0x2dd   :  { %358 = vmatpush1.msra.mxu1 %v1659_v39 }
 0x2de   :  { %359 = vmatprep.subr.mxu1 %v1666_v40 }
 0x2df   :  { %360 = vmatpush1.msra.mxu1 %v1673_v41 }
 0x2e0   :  { %361 = vmatprep.subr.mxu1 %v1680_v42 }
 0x2e1   :  { %362 = vmatpush1.msra.mxu1 %v1687_v43 }
 0x2e2   :  { %363 = vmatprep.subr.mxu1 %v1694_v45 }
 0x2e3   :  { %364 = vmatpush1.msra.mxu1 %v1702_v46 }
 0x2e4   :  { %365 = vmatprep.subr.mxu1 %v1708_v47 }
 0x2e5   :  { %366 = vmatpush1.msra.mxu1 %v1721_v48 }
 0x2e6   :  { %619 = vmatprep.subr.mxu1 %v1615_v32 }
 0x396   :  { %v267_v55 = vpop.f32.mrf.mxu1 }
 0x397   :  { %v273_v57 = vadd.f32 %v267_v55, %v108_v54 }
 0x398   :  { %v269_v58 = vpop.f32.mrf.mxu1 }
 0x399   :  { %1397 = vtanh.f32 %v273_v57  ;;  %v298_v59 = vadd.f32 %v269_v58, %v1754_v56  ;;  %v1265_v62 = vmul.f32 -1.442695, %v273_v57 }
 0x39b   :  { %1399 = vtanh.f32 %v298_v59  ;;  %v1266_v63 = vmul.f32 -1.442695, %v298_v59 }
 0x39c   :  { %1401 = vpow2.f32 %v1265_v62 }
 0x39d   :  { %1403 = vpow2.f32 %v1266_v63 }
 0x3a6   :  { %v1398_v60 = vpop.eup %1397 }
 0x3a7   :  { %283 = vrot.lane.b32.xlu0 %v1398_v60, %s1521_s19 }
 0x3a8   :  { %v1400_v61 = vpop.eup %1399 }
 0x3a9   :  { %308 = vrot.lane.b32.xlu1 %v1400_v61, %s1521_s19  ;;  %v1402_v0 = vpop.eup %1401 }
 0x3aa   :  { %v1404_v1 = vpop.eup %1403  ;;  %v277_v2 = vadd.f32 1.0, %v1402_v0 }
 0x3ab   :  { %v302_v3 = vadd.f32 1.0, %v1404_v1 }
 0x3ac   :  { %1405 = vrcp.f32 %v277_v2 }
 0x3ad   :  { %1407 = vrcp.f32 %v302_v3 }
 0x3b9   :  { %v1406_v4 = vpop.eup %1405 }
 0x3ba   :  { %v1408_v7 = vpop.eup %1407  ;;  %v281_v10 = vmul.f32 %v1406_v4, %v1609_v31 }
 0x3bb   :  { %v306_v13 = vmul.f32 0.0, %v1408_v7 }
 0x419   :  { %v284_v5 = vpop.permute.xlu0 %283 }
 0x41a   :  { %v286_v6 = vmul.f32 %v1406_v4, %v284_v5 }
 0x41b   :  { %v309_v8 = vpop.permute.xlu1 %308 }
 0x41c   :  { %288 = vrot.lane.b32.xlu0 %v286_v6, %s1522_s20  ;;  %v311_v9 = vmul.f32 %v1408_v7, %v309_v8 }
 0x41e   :  { %313 = vrot.lane.b32.xlu1 %v311_v9, %s1522_s20  ;;  %v32_v9 = vld [vmem:[%s2010_s0 + $0x20] sm:$0xff] }
 0x41f   :  { %1359 = vmatprep.mubr.f32.mxu0 %v32_v9 }
 0x48e   :  { %v289_v11 = vpop.permute.xlu0 %288 }
 0x48f   :  { %v1762_v12 = vadd.f32 %v289_v11, %v281_v10  ;;  %v33_v10 = vld [vmem:[%s2010_s0 + $0x28] sm:$0xff]  ;;  %v34_v11 = vld [vmem:[%s2010_s0 + $0x30] sm:$0xff] }
 0x490   :  { %v314_v14 = vpop.permute.xlu1 %313  ;;  %1360 = vmatmul.mubr.f32.gmra.mxu0 %v33_v10 }
 0x491   :  { %1409 = vtanh.f32 %v1762_v12  ;;  %v1765_v15 = vadd.f32 %v314_v14, %v306_v13  ;;  %1362 = vmatprep.mubr.f32.mxu0 %v34_v11 }
 0x493   :  { %1411 = vtanh.f32 %v1765_v15 }
 0x49e   :  { %v1410_v18 = vpop.eup %1409 }
 0x49f   :  { %294 = vrot.lane.b32.xlu0 %v1410_v18, %s1521_s19 }
 0x4a0   :  { %v1412_v20 = vpop.eup %1411 }
 0x4a1   :  { %319 = vrot.lane.b32.xlu1 %v1412_v20, %s1521_s19 }
 0x511   :  { %v295_v21 = vpop.permute.xlu0 %294 }
 0x512   :  { %v297_v22 = vmul.f32 %v1406_v4, %v295_v21 }
 0x513   :  { %v320_v23 = vpop.permute.xlu1 %319 }
 0x514   :  { %324 = vrot.lane.b32.xlu0 %v297_v22, %s1522_s20  ;;  %v322_v24 = vmul.f32 %v1408_v7, %v320_v23 }
 0x516   :  { %328 = vrot.lane.b32.xlu1 %v322_v24, %s1521_s19 }
 0x550   :  { %v1849_v23 = vpop.f32.mrf.mxu0 }
 0x552   :  { %v1851_v24 = vpop.f32.mrf.mxu0 }
 0x586   :  { %v325_v25 = vpop.permute.xlu0 %324 }
 0x588   :  { %v329_v26 = vpop.permute.xlu1 %328 }
 0x589   :  { %v331_v27 = vsel %vm179_vm0, %v325_v25, %v329_v26 }
 0x58a   :  { %1267 = vmatmul.mubr.msk.f32.vlgmr.msra.gmra.mxu1 %vm197_vm1, %v331_v27  ;;  %v118_v27 = vadd.f32 %v1797_v28, %v1600_v19 }
 0x58b   :  { %620 = vmatpush1.msra.mxu1 %v1620_v33  ;;  %667 = vmatprep.mubr.f32.mxu1 %v1523_v49 }
 0x58c   :  { %621 = vmatprep.subr.mxu1 %v1625_v34 }
 0x58d   :  { %622 = vmatpush1.msra.mxu1 %v1631_v35 }
 0x58e   :  { %623 = vmatprep.subr.mxu1 %v1638_v36 }
 0x58f   :  { %624 = vmatpush1.msra.mxu1 %v1645_v37 }
 0x590   :  { %625 = vmatprep.subr.mxu1 %v1652_v38 }
 0x591   :  { %626 = vmatpush1.msra.mxu1 %v1659_v39 }
 0x592   :  { %627 = vmatprep.subr.mxu1 %v1666_v40 }
 0x593   :  { %628 = vmatpush1.msra.mxu1 %v1673_v41 }
 0x594   :  { %629 = vmatprep.subr.mxu1 %v1680_v42 }
 0x595   :  { %630 = vmatpush1.msra.mxu1 %v1687_v43 }
 0x596   :  { %631 = vmatprep.subr.mxu1 %v1694_v45 }
 0x597   :  { %632 = vmatpush1.msra.mxu1 %v1702_v46 }
 0x598   :  { %633 = vmatprep.subr.mxu1 %v1708_v47 }
 0x599   :  { %634 = vmatpush1.msra.mxu1 %v1721_v48 }
 0x59a   :  { %887 = vmatprep.subr.mxu1 %v1615_v32 }
 0x64a   :  { %v401_v31 = vpop.f32.mrf.mxu1 }
 0x64b   :  { %v407_v44 = vadd.f32 %v401_v31, %v113_v30 }
 0x64c   :  { %v403_v50 = vpop.f32.mrf.mxu1 }
 0x64d   :  { %1413 = vtanh.f32 %v407_v44  ;;  %v432_v51 = vadd.f32 %v403_v50, %v1754_v56  ;;  %v1268_v54 = vmul.f32 -1.442695, %v407_v44 }
 0x64f   :  { %1415 = vtanh.f32 %v432_v51  ;;  %v1269_v55 = vmul.f32 -1.442695, %v432_v51 }
 0x650   :  { %1417 = vpow2.f32 %v1268_v54 }
 0x651   :  { %1419 = vpow2.f32 %v1269_v55 }
 0x65a   :  { %v1414_v52 = vpop.eup %1413 }
 0x65b   :  { %417 = vrot.lane.b32.xlu0 %v1414_v52, %s1521_s19 }
 0x65c   :  { %v1416_v53 = vpop.eup %1415 }
 0x65d   :  { %442 = vrot.lane.b32.xlu1 %v1416_v53, %s1521_s19  ;;  %v1418_v57 = vpop.eup %1417 }
 0x65e   :  { %v1420_v58 = vpop.eup %1419  ;;  %v411_v59 = vadd.f32 1.0, %v1418_v57 }
 0x65f   :  { %v436_v60 = vadd.f32 1.0, %v1420_v58 }
 0x660   :  { %1421 = vrcp.f32 %v411_v59 }
 0x661   :  { %1423 = vrcp.f32 %v436_v60 }
 0x66d   :  { %v1422_v61 = vpop.eup %1421 }
 0x66e   :  { %v1424_v0 = vpop.eup %1423  ;;  %v415_v3 = vmul.f32 %v1422_v61, %v1762_v12  ;;  %v35_v12 = vld [vmem:[%s2010_s0 + $0x38] sm:$0xff] }
 0x66f   :  { %v440_v6 = vmul.f32 %v1424_v0, %v1765_v15  ;;  %1363 = vmatmul.mubr.f32.gmra.mxu0 %v35_v12 }
 0x670   :  { %533 = vmatprep.mubr.f32.mxu0 %v1523_v49 }
 0x6cd   :  { %v418_v62 = vpop.permute.xlu0 %417 }
 0x6ce   :  { %v420_v63 = vmul.f32 %v1422_v61, %v418_v62 }
 0x6cf   :  { %v443_v1 = vpop.permute.xlu1 %442 }
 0x6d0   :  { %422 = vrot.lane.b32.xlu0 %v420_v63, %s1522_s20  ;;  %v445_v2 = vmul.f32 %v1424_v0, %v443_v1 }
 0x6d2   :  { %447 = vrot.lane.b32.xlu1 %v445_v2, %s1522_s20 }
 0x72f   :  { %v1853_v25 = vpop.f32.mrf.mxu0 }
 0x731   :  { %v1855_v26 = vpop.f32.mrf.mxu0 }
 0x742   :  { %v423_v4 = vpop.permute.xlu0 %422 }
 0x743   :  { %v1806_v5 = vadd.f32 %v423_v4, %v415_v3 }
 0x744   :  { %v448_v7 = vpop.permute.xlu1 %447 }
 0x745   :  { %1425 = vtanh.f32 %v1806_v5  ;;  %v1810_v8 = vadd.f32 %v448_v7, %v440_v6 }
 0x747   :  { %1427 = vtanh.f32 %v1810_v8 }
 0x752   :  { %v1426_v13 = vpop.eup %1425 }
 0x753   :  { %428 = vrot.lane.b32.xlu0 %v1426_v13, %s1521_s19 }
 0x754   :  { %v1428_v14 = vpop.eup %1427 }
 0x755   :  { %453 = vrot.lane.b32.xlu1 %v1428_v14, %s1521_s19 }
 0x7c5   :  { %v429_v15 = vpop.permute.xlu0 %428 }
 0x7c6   :  { %v431_v16 = vmul.f32 %v1422_v61, %v429_v15  ;;  %v123_v15 = vadd.f32 %v1851_v24, %v1600_v19 }
 0x7c7   :  { %v454_v17 = vpop.permute.xlu1 %453 }
 0x7c8   :  { %458 = vrot.lane.b32.xlu0 %v431_v16, %s1522_s20  ;;  %v456_v18 = vmul.f32 %v1424_v0, %v454_v17 }
 0x7ca   :  { %462 = vrot.lane.b32.xlu1 %v456_v18, %s1521_s19 }
 0x83a   :  { %v459_v20 = vpop.permute.xlu0 %458 }
 0x83c   :  { %v463_v21 = vpop.permute.xlu1 %462 }
 0x83d   :  { %v465_v22 = vsel %vm179_vm0, %v459_v20, %v463_v21 }
 0x83e   :  { %1270 = vmatmul.mubr.msk.f32.vlgmr.msra.gmra.mxu0 %vm197_vm1, %v465_v22 }
 0x83f   :  { %754 = vmatpush1.msra.mxu0 %v1620_v33  ;;  %801 = vmatprep.mubr.f32.mxu0 %v1523_v49 }
 0x840   :  { %755 = vmatprep.subr.mxu0 %v1625_v34 }
 0x841   :  { %756 = vmatpush1.msra.mxu0 %v1631_v35 }
 0x842   :  { %757 = vmatprep.subr.mxu0 %v1638_v36 }
 0x843   :  { %758 = vmatpush1.msra.mxu0 %v1645_v37 }
 0x844   :  { %759 = vmatprep.subr.mxu0 %v1652_v38 }
 0x845   :  { %760 = vmatpush1.msra.mxu0 %v1659_v39 }
 0x846   :  { %761 = vmatprep.subr.mxu0 %v1666_v40 }
 0x847   :  { %762 = vmatpush1.msra.mxu0 %v1673_v41 }
 0x848   :  { %763 = vmatprep.subr.mxu0 %v1680_v42 }
 0x849   :  { %764 = vmatpush1.msra.mxu0 %v1687_v43 }
 0x84a   :  { %765 = vmatprep.subr.mxu0 %v1694_v45 }
 0x84b   :  { %766 = vmatpush1.msra.mxu0 %v1702_v46 }
 0x84c   :  { %767 = vmatprep.subr.mxu0 %v1708_v47 }
 0x84d   :  { %768 = vmatpush1.msra.mxu0 %v1721_v48 }
 0x84e   :  { %1021 = vmatprep.subr.mxu0 %v1615_v32 }
 0x8fe   :  { %v535_v29 = vpop.f32.mrf.mxu0 }
 0x8ff   :  { %v541_v30 = vadd.f32 %v535_v29, %v118_v27 }
 0x900   :  { %v537_v31 = vpop.f32.mrf.mxu0 }
 0x901   :  { %1429 = vtanh.f32 %v541_v30  ;;  %v566_v44 = vadd.f32 %v537_v31, %v1754_v56  ;;  %v1271_v52 = vmul.f32 -1.442695, %v541_v30 }
 0x903   :  { %1431 = vtanh.f32 %v566_v44  ;;  %v1272_v53 = vmul.f32 -1.442695, %v566_v44 }
 0x904   :  { %1433 = vpow2.f32 %v1271_v52 }
 0x905   :  { %1435 = vpow2.f32 %v1272_v53 }
 0x90e   :  { %v1430_v50 = vpop.eup %1429 }
 0x90f   :  { %551 = vrot.lane.b32.xlu0 %v1430_v50, %s1521_s19 }
 0x910   :  { %v1432_v51 = vpop.eup %1431 }
 0x911   :  { %576 = vrot.lane.b32.xlu1 %v1432_v51, %s1521_s19  ;;  %v1434_v54 = vpop.eup %1433 }
 0x912   :  { %v1436_v55 = vpop.eup %1435  ;;  %v545_v28 = vadd.f32 1.0, %v1434_v54 }
 0x913   :  { %v570_v57 = vadd.f32 1.0, %v1436_v55 }
 0x914   :  { %1437 = vrcp.f32 %v545_v28 }
 0x915   :  { %1439 = vrcp.f32 %v570_v57 }
 0x921   :  { %v1438_v58 = vpop.eup %1437 }
 0x922   :  { %v1440_v61 = vpop.eup %1439  ;;  %v549_v0 = vmul.f32 %v1438_v58, %v1806_v5 }
 0x923   :  { %v574_v3 = vmul.f32 %v1440_v61, %v1810_v8 }
 0x981   :  { %v552_v59 = vpop.permute.xlu0 %551 }
 0x982   :  { %v554_v60 = vmul.f32 %v1438_v58, %v552_v59 }
 0x983   :  { %v577_v62 = vpop.permute.xlu1 %576 }
 0x984   :  { %556 = vrot.lane.b32.xlu0 %v554_v60, %s1522_s20  ;;  %v579_v63 = vmul.f32 %v1440_v61, %v577_v62 }
 0x986   :  { %581 = vrot.lane.b32.xlu1 %v579_v63, %s1522_s20 }
 0x9f6   :  { %v557_v1 = vpop.permute.xlu0 %556 }
 0x9f7   :  { %v1865_v2 = vadd.f32 %v557_v1, %v549_v0 }
 0x9f8   :  { %v582_v4 = vpop.permute.xlu1 %581 }
 0x9f9   :  { %1441 = vtanh.f32 %v1865_v2  ;;  %v1869_v6 = vadd.f32 %v582_v4, %v574_v3 }
 0x9fb   :  { %1443 = vtanh.f32 %v1869_v6 }
 0xa06   :  { %v1442_v7 = vpop.eup %1441 }
 0xa07   :  { %562 = vrot.lane.b32.xlu0 %v1442_v7, %s1521_s19 }
 0xa08   :  { %v1444_v9 = vpop.eup %1443 }
 0xa09   :  { %587 = vrot.lane.b32.xlu1 %v1444_v9, %s1521_s19 }
 0xa79   :  { %v563_v10 = vpop.permute.xlu0 %562 }
 0xa7a   :  { %v565_v5 = vmul.f32 %v1438_v58, %v563_v10 }
 0xa7b   :  { %v588_v11 = vpop.permute.xlu1 %587 }
 0xa7c   :  { %592 = vrot.lane.b32.xlu0 %v565_v5, %s1522_s20  ;;  %v590_v12 = vmul.f32 %v1440_v61, %v588_v11 }
 0xa7e   :  { %596 = vrot.lane.b32.xlu1 %v590_v12, %s1521_s19 }
 0xaee   :  { %v593_v8 = vpop.permute.xlu0 %592 }
 0xaf0   :  { %v597_v13 = vpop.permute.xlu1 %596 }
 0xaf1   :  { %v599_v14 = vsel %vm179_vm0, %v593_v8, %v597_v13 }
 0xaf2   :  { %1273 = vmatmul.mubr.msk.f32.vlgmr.msra.gmra.mxu1 %vm197_vm1, %v599_v14 }
 0xaf3   :  { %888 = vmatpush1.msra.mxu1 %v1620_v33  ;;  %935 = vmatprep.mubr.f32.mxu1 %v1523_v49 }
 0xaf4   :  { %889 = vmatprep.subr.mxu1 %v1625_v34 }
 0xaf5   :  { %890 = vmatpush1.msra.mxu1 %v1631_v35 }
 0xaf6   :  { %891 = vmatprep.subr.mxu1 %v1638_v36 }
 0xaf7   :  { %892 = vmatpush1.msra.mxu1 %v1645_v37 }
 0xaf8   :  { %893 = vmatprep.subr.mxu1 %v1652_v38 }
 0xaf9   :  { %894 = vmatpush1.msra.mxu1 %v1659_v39 }
 0xafa   :  { %895 = vmatprep.subr.mxu1 %v1666_v40 }
 0xafb   :  { %896 = vmatpush1.msra.mxu1 %v1673_v41 }
 0xafc   :  { %897 = vmatprep.subr.mxu1 %v1680_v42 }
 0xafd   :  { %898 = vmatpush1.msra.mxu1 %v1687_v43 }
 0xafe   :  { %899 = vmatprep.subr.mxu1 %v1694_v45 }
 0xaff   :  { %900 = vmatpush1.msra.mxu1 %v1702_v46 }
 0xb00   :  { %901 = vmatprep.subr.mxu1 %v1708_v47 }
 0xb01   :  { %902 = vmatpush1.msra.mxu1 %v1721_v48 }
 0xb02   :  { %1365 = vmatprep.subr.mxu1 %v1523_v49 }
 0xbb2   :  { %v669_v16 = vpop.f32.mrf.mxu1 }
 0xbb3   :  { %v675_v17 = vadd.f32 %v669_v16, %v123_v15 }
 0xbb4   :  { %v671_v18 = vpop.f32.mrf.mxu1 }
 0xbb5   :  { %1445 = vtanh.f32 %v675_v17  ;;  %v700_v20 = vadd.f32 %v671_v18, %v1754_v56  ;;  %v1274_v27 = vmul.f32 -1.442695, %v675_v17 }
 0xbb7   :  { %1447 = vtanh.f32 %v700_v20  ;;  %v1275_v29 = vmul.f32 -1.442695, %v700_v20 }
 0xbb8   :  { %1449 = vpow2.f32 %v1274_v27 }
 0xbb9   :  { %1451 = vpow2.f32 %v1275_v29 }
 0xbc2   :  { %v1446_v21 = vpop.eup %1445 }
 0xbc3   :  { %685 = vrot.lane.b32.xlu0 %v1446_v21, %s1521_s19 }
 0xbc4   :  { %v1448_v22 = vpop.eup %1447 }
 0xbc5   :  { %710 = vrot.lane.b32.xlu1 %v1448_v22, %s1521_s19  ;;  %v1450_v30 = vpop.eup %1449 }
 0xbc6   :  { %v1452_v31 = vpop.eup %1451  ;;  %v679_v24 = vadd.f32 1.0, %v1450_v30 }
 0xbc7   :  { %v704_v44 = vadd.f32 1.0, %v1452_v31 }
 0xbc8   :  { %1453 = vrcp.f32 %v679_v24 }
 0xbc9   :  { %1455 = vrcp.f32 %v704_v44 }
 0xbd5   :  { %v1454_v50 = vpop.eup %1453 }
 0xbd6   :  { %v1456_v53 = vpop.eup %1455  ;;  %v683_v28 = vmul.f32 %v1454_v50, %v1865_v2 }
 0xbd7   :  { %v708_v59 = vmul.f32 %v1456_v53, %v1869_v6 }
 0xc35   :  { %v686_v51 = vpop.permute.xlu0 %685 }
 0xc36   :  { %v688_v52 = vmul.f32 %v1454_v50, %v686_v51 }
 0xc37   :  { %v711_v54 = vpop.permute.xlu1 %710 }
 0xc38   :  { %690 = vrot.lane.b32.xlu0 %v688_v52, %s1522_s20  ;;  %v713_v55 = vmul.f32 %v1456_v53, %v711_v54 }
 0xc3a   :  { %715 = vrot.lane.b32.xlu1 %v713_v55, %s1522_s20 }
 0xcaa   :  { %v691_v57 = vpop.permute.xlu0 %690 }
 0xcab   :  { %v1903_v58 = vadd.f32 %v691_v57, %v683_v28 }
 0xcac   :  { %v716_v60 = vpop.permute.xlu1 %715 }
 0xcad   :  { %1457 = vtanh.f32 %v1903_v58  ;;  %v1907_v61 = vadd.f32 %v716_v60, %v708_v59 }
 0xcaf   :  { %1459 = vtanh.f32 %v1907_v61 }
 0xcba   :  { %v1458_v62 = vpop.eup %1457 }
 0xcbb   :  { %696 = vrot.lane.b32.xlu0 %v1458_v62, %s1521_s19 }
 0xcbc   :  { %v1460_v63 = vpop.eup %1459 }
 0xcbd   :  { %721 = vrot.lane.b32.xlu1 %v1460_v63, %s1521_s19 }
 0xd2d   :  { %v697_v0 = vpop.permute.xlu0 %696 }
 0xd2e   :  { %v699_v1 = vmul.f32 %v1454_v50, %v697_v0 }
 0xd2f   :  { %v722_v2 = vpop.permute.xlu1 %721 }
 0xd30   :  { %726 = vrot.lane.b32.xlu0 %v699_v1, %s1522_s20  ;;  %v724_v3 = vmul.f32 %v1456_v53, %v722_v2 }
 0xd32   :  { %730 = vrot.lane.b32.xlu1 %v724_v3, %s1521_s19 }
 0xda2   :  { %v727_v4 = vpop.permute.xlu0 %726 }
 0xda4   :  { %v731_v6 = vpop.permute.xlu1 %730 }
 0xda5   :  { %v733_v7 = vsel %vm179_vm0, %v727_v4, %v731_v6 }
 0xda6   :  { %1276 = vmatmul.mubr.msk.f32.vlgmr.msra.gmra.mxu0 %vm197_vm1, %v733_v7 }
 0xda7   :  { %1022 = vmatpush1.msra.mxu0 %v1620_v33  ;;  %1069 = vmatprep.mubr.f32.mxu0 %v1523_v49  ;;  %v128_v33 = vadd.f32 %v1849_v23, %v1600_v19 }
 0xda8   :  { %1023 = vmatprep.subr.mxu0 %v1625_v34 }
 0xda9   :  { %1024 = vmatpush1.msra.mxu0 %v1631_v35 }
 0xdaa   :  { %1025 = vmatprep.subr.mxu0 %v1638_v36 }
 0xdab   :  { %1026 = vmatpush1.msra.mxu0 %v1645_v37 }
 0xdac   :  { %1027 = vmatprep.subr.mxu0 %v1652_v38 }
 0xdad   :  { %1028 = vmatpush1.msra.mxu0 %v1659_v39 }
 0xdae   :  { %1029 = vmatprep.subr.mxu0 %v1666_v40 }
 0xdaf   :  { %1030 = vmatpush1.msra.mxu0 %v1673_v41 }
 0xdb0   :  { %1031 = vmatprep.subr.mxu0 %v1680_v42 }
 0xdb1   :  { %1032 = vmatpush1.msra.mxu0 %v1687_v43 }
 0xdb2   :  { %1033 = vmatprep.subr.mxu0 %v1694_v45 }
 0xdb3   :  { %1034 = vmatpush1.msra.mxu0 %v1702_v46 }
 0xdb4   :  { %1035 = vmatprep.subr.mxu0 %v1708_v47 }
 0xdb5   :  { %1036 = vmatpush1.msra.mxu0 %v1721_v48 }
 0xe66   :  { %v803_v35 = vpop.f32.mrf.mxu0 }
 0xe67   :  { %v809_v37 = vadd.f32 %v803_v35, %v128_v33 }
 0xe68   :  { %v805_v39 = vpop.f32.mrf.mxu0 }
 0xe69   :  { %1461 = vtanh.f32 %v809_v37  ;;  %v834_v41 = vadd.f32 %v805_v39, %v1754_v56  ;;  %v1277_v46 = vmul.f32 -1.442695, %v809_v37 }
 0xe6b   :  { %1463 = vtanh.f32 %v834_v41  ;;  %v1278_v10 = vmul.f32 -1.442695, %v834_v41 }
 0xe6c   :  { %1465 = vpow2.f32 %v1277_v46 }
 0xe6d   :  { %1467 = vpow2.f32 %v1278_v10  ;;  %v138_v10 = vadd.f32 %v1853_v25, %v1600_v19 }
 0xe76   :  { %v1462_v9 = vpop.eup %1461 }
 0xe77   :  { %819 = vrot.lane.b32.xlu0 %v1462_v9, %s1521_s19 }
 0xe78   :  { %v1464_v43 = vpop.eup %1463 }
 0xe79   :  { %844 = vrot.lane.b32.xlu1 %v1464_v43, %s1521_s19  ;;  %v1466_v48 = vpop.eup %1465 }
 0xe7a   :  { %v1468_v5 = vpop.eup %1467  ;;  %v813_v23 = vadd.f32 1.0, %v1466_v48 }
 0xe7b   :  { %v838_v11 = vadd.f32 1.0, %v1468_v5 }
 0xe7c   :  { %1469 = vrcp.f32 %v813_v23 }
 0xe7d   :  { %1471 = vrcp.f32 %v838_v11 }
 0xe89   :  { %v1470_v12 = vpop.eup %1469 }
 0xe8a   :  { %v1472_v14 = vpop.eup %1471  ;;  %v817_v17 = vmul.f32 %v1470_v12, %v1903_v58 }
 0xe8b   :  { %v842_v21 = vmul.f32 %v1472_v14, %v1907_v61 }
 0xee9   :  { %v820_v8 = vpop.permute.xlu0 %819 }
 0xeea   :  { %v822_v13 = vmul.f32 %v1470_v12, %v820_v8 }
 0xeeb   :  { %v845_v15 = vpop.permute.xlu1 %844 }
 0xeec   :  { %824 = vrot.lane.b32.xlu0 %v822_v13, %s1522_s20  ;;  %v847_v16 = vmul.f32 %v1472_v14, %v845_v15 }
 0xeee   :  { %849 = vrot.lane.b32.xlu1 %v847_v16, %s1522_s20 }
 0xf5e   :  { %v825_v18 = vpop.permute.xlu0 %824 }
 0xf5f   :  { %v1940_v20 = vadd.f32 %v825_v18, %v817_v17 }
 0xf60   :  { %v850_v22 = vpop.permute.xlu1 %849 }
 0xf61   :  { %1473 = vtanh.f32 %v1940_v20  ;;  %v1944_v27 = vadd.f32 %v850_v22, %v842_v21 }
 0xf63   :  { %1475 = vtanh.f32 %v1944_v27 }
 0xf6e   :  { %v1474_v29 = vpop.eup %1473 }
 0xf6f   :  { %830 = vrot.lane.b32.xlu0 %v1474_v29, %s1521_s19 }
 0xf70   :  { %v1476_v30 = vpop.eup %1475 }
 0xf71   :  { %855 = vrot.lane.b32.xlu1 %v1476_v30, %s1521_s19 }
 0xfe1   :  { %v831_v31 = vpop.permute.xlu0 %830 }
 0xfe2   :  { %v833_v24 = vmul.f32 %v1470_v12, %v831_v31 }
 0xfe3   :  { %v856_v44 = vpop.permute.xlu1 %855 }
 0xfe4   :  { %860 = vrot.lane.b32.xlu0 %v833_v24, %s1522_s20  ;;  %v858_v50 = vmul.f32 %v1472_v14, %v856_v44 }
 0xfe6   :  { %864 = vrot.lane.b32.xlu1 %v858_v50, %s1521_s19 }
0x1056   :  { %v861_v51 = vpop.permute.xlu0 %860 }
0x1058   :  { %v865_v52 = vpop.permute.xlu1 %864 }
0x1059   :  { %v867_v53 = vsel %vm179_vm0, %v861_v51, %v865_v52 }
0x105a   :  { %1279 = vmatmul.mubr.msk.f32.vlgmr.msra.gmra.mxu1 %vm197_vm1, %v867_v53 }
0x105b   :  { %1366 = vmatpush3.msra.mxu1 %v1615_v32  ;;  %v133_v32 = vadd.f32 %v1855_v26, %v1600_v19  ;;  %1381 = vmatprep.mubr.msk.f32.mxu1 %vm1524_vm2, %v1523_v49 }
0x105c   :  { %1367 = vmatprep.subr.mxu1 %v1523_v49 }
0x105d   :  { %1368 = vmatpush3.msra.mxu1 %v1625_v34 }
0x105e   :  { %1369 = vmatprep.subr.mxu1 %v1523_v49 }
0x105f   :  { %1370 = vmatpush3.msra.mxu1 %v1638_v36 }
0x1060   :  { %1371 = vmatprep.subr.mxu1 %v1523_v49 }
0x1061   :  { %1372 = vmatpush3.msra.mxu1 %v1652_v38 }
0x1062   :  { %1373 = vmatprep.subr.mxu1 %v1523_v49 }
0x1063   :  { %1374 = vmatpush3.msra.mxu1 %v1666_v40 }
0x1064   :  { %1375 = vmatprep.subr.mxu1 %v1523_v49 }
0x1065   :  { %1376 = vmatpush3.msra.mxu1 %v1680_v42 }
0x1066   :  { %1377 = vmatprep.subr.mxu1 %v1523_v49 }
0x1067   :  { %1378 = vmatpush3.msra.mxu1 %v1694_v45 }
0x1068   :  { %1379 = vmatprep.subr.mxu1 %v1523_v49 }
0x1069   :  { %1380 = vmatpush3.msra.mxu1 %v1708_v47 }
0x111a   :  { %v937_v34 = vpop.f32.mrf.mxu1 }
0x111b   :  { %v943_v36 = vadd.f32 %v937_v34, %v133_v32 }
0x111c   :  { %v939_v38 = vpop.f32.mrf.mxu1 }
0x111d   :  { %1477 = vtanh.f32 %v943_v36  ;;  %v968_v40 = vadd.f32 %v939_v38, %v1754_v56  ;;  %v1280_v45 = vmul.f32 -1.442695, %v943_v36 }
0x111f   :  { %1479 = vtanh.f32 %v968_v40  ;;  %v1281_v55 = vmul.f32 -1.442695, %v968_v40 }
0x1120   :  { %1481 = vpow2.f32 %v1280_v45 }
0x1121   :  { %1483 = vpow2.f32 %v1281_v55 }
0x112a   :  { %v1478_v54 = vpop.eup %1477 }
0x112b   :  { %953 = vrot.lane.b32.xlu0 %v1478_v54, %s1521_s19 }
0x112c   :  { %v1480_v42 = vpop.eup %1479 }
0x112d   :  { %978 = vrot.lane.b32.xlu1 %v1480_v42, %s1521_s19  ;;  %v1482_v47 = vpop.eup %1481 }
0x112e   :  { %v1484_v28 = vpop.eup %1483  ;;  %v947_v26 = vadd.f32 1.0, %v1482_v47 }
0x112f   :  { %v972_v57 = vadd.f32 1.0, %v1484_v28 }
0x1130   :  { %1485 = vrcp.f32 %v947_v26 }
0x1131   :  { %1487 = vrcp.f32 %v972_v57 }
0x113d   :  { %v1486_v58 = vpop.eup %1485 }
0x113e   :  { %v1488_v61 = vpop.eup %1487  ;;  %v951_v0 = vmul.f32 %v1486_v58, %v1940_v20 }
0x113f   :  { %v976_v3 = vmul.f32 %v1488_v61, %v1944_v27 }
0x119d   :  { %v954_v59 = vpop.permute.xlu0 %953 }
0x119e   :  { %v956_v60 = vmul.f32 %v1486_v58, %v954_v59 }
0x119f   :  { %v979_v62 = vpop.permute.xlu1 %978 }
0x11a0   :  { %958 = vrot.lane.b32.xlu0 %v956_v60, %s1522_s20  ;;  %v981_v63 = vmul.f32 %v1488_v61, %v979_v62  ;;  %v1233_v60 = vld [vmem:[%s2009_s1 + $0x181] ss:$0 sm:$0xff] }
0x11a2   :  { %983 = vrot.lane.b32.xlu1 %v981_v63, %s1522_s20 }
0x1212   :  { %v959_v1 = vpop.permute.xlu0 %958 }
0x1213   :  { %v961_v2 = vadd.f32 %v959_v1, %v951_v0 }
0x1214   :  { %v984_v4 = vpop.permute.xlu1 %983 }
0x1215   :  { %1489 = vtanh.f32 %v961_v2  ;;  %v986_v6 = vadd.f32 %v984_v4, %v976_v3 }
0x1217   :  { %1491 = vtanh.f32 %v986_v6 }
0x1222   :  { %v1490_v7 = vpop.eup %1489 }
0x1223   :  { %964 = vrot.lane.b32.xlu0 %v1490_v7, %s1521_s19 }
0x1224   :  { %v1492_v33 = vpop.eup %1491 }
0x1225   :  { %989 = vrot.lane.b32.xlu1 %v1492_v33, %s1521_s19 }
0x1295   :  { %v965_v35 = vpop.permute.xlu0 %964 }
0x1296   :  { %v967_v37 = vmul.f32 %v1486_v58, %v965_v35 }
0x1297   :  { %v990_v39 = vpop.permute.xlu1 %989 }
0x1298   :  { %994 = vrot.lane.b32.xlu0 %v967_v37, %s1522_s20  ;;  %v992_v41 = vmul.f32 %v1488_v61, %v990_v39 }
0x129a   :  { %998 = vrot.lane.b32.xlu1 %v992_v41, %s1521_s19 }
0x130a   :  { %v995_v9 = vpop.permute.xlu0 %994 }
0x130c   :  { %v999_v43 = vpop.permute.xlu1 %998 }
0x130d   :  { %v1001_v46 = vsel %vm179_vm0, %v995_v9, %v999_v43 }
0x130e   :  { %1282 = vmatmul.mubr.msk.f32.vlgmr.msra.gmra.mxu0 %vm197_vm1, %v1001_v46 }
0x13ce   :  { %v1071_v48 = vpop.f32.mrf.mxu0 }
0x13cf   :  { %v1077_v5 = vadd.f32 %v1071_v48, %v138_v10 }
0x13d0   :  { %v1073_v23 = vpop.f32.mrf.mxu0 }
0x13d1   :  { %1493 = vtanh.f32 %v1077_v5  ;;  %v1102_v11 = vadd.f32 %v1073_v23, %v1754_v56  ;;  %v1283_v13 = vmul.f32 -1.442695, %v1077_v5 }
0x13d3   :  { %1495 = vtanh.f32 %v1102_v11  ;;  %v1284_v14 = vmul.f32 -1.442695, %v1102_v11 }
0x13d4   :  { %1497 = vpow2.f32 %v1283_v13 }
0x13d5   :  { %1499 = vpow2.f32 %v1284_v14 }
0x13de   :  { %v1494_v12 = vpop.eup %1493 }
0x13df   :  { %1087 = vrot.lane.b32.xlu0 %v1494_v12, %s1521_s19 }
0x13e0   :  { %v1496_v8 = vpop.eup %1495 }
0x13e1   :  { %1112 = vrot.lane.b32.xlu1 %v1496_v8, %s1521_s19  ;;  %v1498_v15 = vpop.eup %1497 }
0x13e2   :  { %v1500_v16 = vpop.eup %1499  ;;  %v1081_v19 = vadd.f32 1.0, %v1498_v15 }
0x13e3   :  { %v1106_v25 = vadd.f32 1.0, %v1500_v16 }
0x13e4   :  { %1501 = vrcp.f32 %v1081_v19 }
0x13e5   :  { %1503 = vrcp.f32 %v1106_v25 }
0x13f1   :  { %v1502_v17 = vpop.eup %1501 }
0x13f2   :  { %v1504_v21 = vpop.eup %1503  ;;  %v1085_v29 = vmul.f32 %v1502_v17, %v961_v2 }
0x13f3   :  { %v1110_v24 = vmul.f32 %v1504_v21, %v986_v6 }
0x1451   :  { %v1088_v18 = vpop.permute.xlu0 %1087 }
0x1452   :  { %v1090_v20 = vmul.f32 %v1502_v17, %v1088_v18 }
0x1453   :  { %v1113_v22 = vpop.permute.xlu1 %1112 }
0x1454   :  { %1092 = vrot.lane.b32.xlu0 %v1090_v20, %s1522_s20  ;;  %v1115_v27 = vmul.f32 %v1504_v21, %v1113_v22 }
0x1456   :  { %1117 = vrot.lane.b32.xlu1 %v1115_v27, %s1522_s20 }
0x14c6   :  { %v1093_v30 = vpop.permute.xlu0 %1092 }
0x14c7   :  { %v1095_v31 = vadd.f32 %v1093_v30, %v1085_v29 }
0x14c8   :  { %v1118_v44 = vpop.permute.xlu1 %1117 }
0x14c9   :  { %1505 = vtanh.f32 %v1095_v31  ;;  %v1120_v50 = vadd.f32 %v1118_v44, %v1110_v24 }
0x14cb   :  { %1507 = vtanh.f32 %v1120_v50 }
0x14d6   :  { %v1506_v51 = vpop.eup %1505 }
0x14d7   :  { %1098 = vrot.lane.b32.xlu0 %v1506_v51, %s1521_s19 }
0x14d8   :  { %v1508_v52 = vpop.eup %1507 }
0x14d9   :  { %1123 = vrot.lane.b32.xlu1 %v1508_v52, %s1521_s19 }
0x1549   :  { %v1099_v53 = vpop.permute.xlu0 %1098 }
0x154a   :  { %v1101_v32 = vmul.f32 %v1502_v17, %v1099_v53 }
0x154b   :  { %v1124_v34 = vpop.permute.xlu1 %1123 }
0x154c   :  { %1128 = vrot.lane.b32.xlu0 %v1101_v32, %s1522_s20  ;;  %v1126_v36 = vmul.f32 %v1504_v21, %v1124_v34 }
0x154e   :  { %1132 = vrot.lane.b32.xlu1 %v1126_v36, %s1521_s19 }
0x15be   :  { %v1129_v38 = vpop.permute.xlu0 %1128 }
0x15c0   :  { %v1133_v40 = vpop.permute.xlu1 %1132 }
0x15c1   :  { %v1135_v54 = vsel %vm179_vm0, %v1129_v38, %v1133_v40 }
0x15c2   :  { %1382 = vmatmul.mubr.msk.f32.vlgmr.msra.gmra.mxu1 %vm197_vm1, %v1135_v54 }
0x1682   :  { %v1205_v42 = vpop.f32.mrf.mxu1 }
0x1683   :  { %v1206_v45 = vadd.f32 %v1205_v42, %v1754_v56 }
0x1684   :  { %v1383_v55 = vpop.f32.mrf.mxu1 }
0x1685   :  { %1509 = vtanh.f32 %v1206_v45  ;;  %v1286_v47 = vmul.f32 -1.442695, %v1206_v45 }
0x1687   :  { %1511 = vpow2.f32 %v1286_v47 }
0x1692   :  { %v1510_v49 = vpop.eup %1509 }
0x1693   :  { %1218 = vrot.lane.b32.xlu0 %v1510_v49, %s1521_s19 }
0x1694   :  { %v1512_v28 = vpop.eup %1511 }
0x1695   :  { %v1212_v26 = vadd.f32 1.0, %v1512_v28 }
0x1697   :  { %1513 = vrcp.f32 %v1212_v26 }
0x16a4   :  { %v1514_v57 = vpop.eup %1513 }
0x16a5   :  { %v1216_v56 = vmul.f32 %v1514_v57, %v1120_v50 }
0x1705   :  { %v1219_v58 = vpop.permute.xlu0 %1218 }
0x1706   :  { %v1221_v59 = vmul.f32 %v1514_v57, %v1219_v58 }
0x1708   :  { %1223 = vrot.lane.b32.xlu1 %v1221_v59, %s1522_s20 }
0x170c   :  { %1235 = vrot.lane.b32.xlu1 %v1233_v60, %s1525_s14 }
0x177a   :  { %v1224_v61 = vpop.permute.xlu1 %1223 }
0x177b   :  { %v1226_v62 = vadd.f32 %v1224_v61, %v1216_v56 }
0x177d   :  { %1515 = vtanh.f32 %v1226_v62 }
0x177e   :  { %v1236_v1 = vpop.permute.xlu1 %1235 }
0x178a   :  { %v1516_v63 = vpop.eup %1515 }
0x178b   :  { %1229 = vrot.lane.b32.xlu0 %v1516_v63, %s1521_s19 }
0x17fd   :  { %v1230_v0 = vpop.permute.xlu0 %1229 }
0x17fe   :  { %v1232_v2 = vmul.f32 %v1514_v57, %v1230_v0 }
0x1800   :  { %v1238_v3 = vmul.f32 %v1236_v1, %v1232_v2 }
0x1802   :  { %1240 = vrot.lane.b32.xlu0 %v1238_v3, %s1522_s20 }
0x1874   :  { %v1241_v4 = vpop.permute.xlu0 %1240 }
0x1875   :  { %v1243_v6 = vsel %vm179_vm0, %v1241_v4, 0.0 }
0x1876   :  { %1244 = vadd.xlane.f32.xlu1 %v1243_v6 }
0x18ff   :  { %v1245_v7 = vpop.xlane.xlu1 %1244 }
0x1900   :  { %v1246_v33 = vadd.f32 %v1245_v7, %v1233_v60 }
0x1902   :  { %v1287_v35 = vmul.f32 -1.442695, %v1246_v33 }
0x1904   :  { %1517 = vpow2.f32 %v1287_v35 }
0x1911   :  { %v1518_v37 = vpop.eup %1517 }
0x1912   :  { %v1250_v39 = vadd.f32 1.0, %v1518_v37 }
0x1914   :  { %1519 = vrcp.f32 %v1250_v39 }
0x1921   :  { %v1520_v41 = vpop.eup %1519 }
0x1922   :  { %1254 = vrot.lane.b32.xlu0 %v1520_v41, %s1525_s14 }
0x1994   :  { %v1255_v9 = vpop.permute.xlu0 %1254 }
0x1995   :  { %1258 = vst.msk [vmem:[%s2011_s2] sm:$0xff] %vm1257_vm3, %v1255_v9 }

</bundles_post_ra>
